<compile_context>
chip_gen: v6e
topology: v6e:2x2x1
jax: 0.10.0
libtpu: 0.0.40
codegen_flags: <defaults>
</compile_context>

<pallas_src>
import functools
import math

import jax
import jax.numpy as jnp
from jax import lax
from jax.experimental import pallas as pl
from jax.experimental.pallas import tpu as pltpu


# --------------------------------- helpers ------------------------------------
def _round_up(x, m):
    return ((x + m - 1) // m) * m


def _vmem_capacity_bytes():
    try:
        return int(pltpu.get_tpu_info().vmem_capacity_bytes)
    except Exception:
        return 64 * 1024 * 1024          # conservative default (v7x per-core VMEM)


def _vmem_estimate(qt, Skv, d_model, Hdk, Hdv, n_heads, act_b, cmp_b, attn_b,
                   emit_attn):
    """Rough VMEM footprint (bytes) of one grid step at query-tile size qt."""
    fixed = (
        2 * 2 * Skv * d_model * act_b                          # K, V blocks (x2 bufs)
        + Skv * (Hdk + Hdv) * cmp_b                            # cached K/V projections
        + ((2 * Hdk + Hdv) * d_model + d_model * Hdv) * cmp_b  # resident weights
    )
    per = (
        2 * qt * d_model * 4          # Q tile (f32, double-buffered)
        + 2 * qt * Skv * 1            # mask tile (int8, double-buffered)
        + 2 * qt * d_model * 4        # out tile (f32, double-buffered)
        + qt * Hdv * cmp_b            # ctx scratch
        + 3 * qt * Skv * 4            # live per-head scores / probs (f32)
    )
    if emit_attn:
        per += 2 * n_heads * qt * Skv * attn_b
    return fixed + per


def _choose_q_tile(Sq, Skv, d_model, Hdk, Hdv, n_heads, act_b, cmp_b, attn_b,
                   emit_attn):
    """Largest q-tile whose estimated VMEM footprint fits this chip."""
    budget = int(_vmem_capacity_bytes() * 0.7)   # headroom for compiler scratch
    cap = min(_round_up(Sq, 8), 512)
    candidates = [t for t in (512, 384, 256, 128, 64, 32, 16, 8) if t <= cap] or [8]
    for qt in candidates:
        if _vmem_estimate(qt, Skv, d_model, Hdk, Hdv, n_heads,
                          act_b, cmp_b, attn_b, emit_attn) <= budget:
            return qt
    return candidates[-1]


# ------------------------- fused MultiHeadAttention kernel -------------------------
def _fused_mha_kernel(q_ref, k_ref, v_ref, mask_ref,
                      wq_ref, bq_ref, wk_ref, bk_ref, wv_ref, bv_ref,
                      wo_ref, bo_ref, g_ref, beta_ref,
                      out_ref, *rest,
                      n_heads, d_k, d_v, scale, eps, compute_dtype, emit_attn):
    """Whole forward for one (batch, q-tile) grid step.

    Block shapes (leading batch dim squeezed):
      q_ref    : (TQ,  d_model) f32      query rows (also the residual)
      k_ref/v_ref : (Skv, d_model) compute_dtype   full K/V, resident over t
      mask_ref : (TQ, Skv) int8          nonzero == masked out
      wq/wk/wv : (H*d, d_model) compute_dtype      PyTorch Linear layout [out, in]
      wo_ref   : (d_model, H*d_v) compute_dtype
      biases / LN params : f32
      out_ref  : (TQ, d_model)
      attn_ref : (n_heads, TQ, Skv) (optional output)
    Scratch:
      kp_scr (Skv, H*d_k), vp_scr (Skv, H*d_v) : cached K/V projections
      ctx_scr (TQ, H*d_v)                      : lane-dense context
    """
    if emit_attn:
        attn_ref, kp_scr, vp_scr, ctx_scr = rest
    else:
        attn_ref = None
        kp_scr, vp_scr, ctx_scr = rest

    f32 = jnp.float32
    # contract the LAST dim of both operands (x @ W^T with no traced transpose)
    dn = (((1,), (1,)), ((), ()))

    # ---- K/V projections: computed once per batch element, cached over q-tiles ----
    @pl.when(pl.program_id(1) == 0)
    def _():
        k = lax.dot_general(k_ref[...], wk_ref[...], dn,
                            preferred_element_type=f32) + bk_ref[...]
        v = lax.dot_general(v_ref[...], wv_ref[...], dn,
                            preferred_element_type=f32) + bv_ref[...]
        kp_scr[...] = k.astype(kp_scr.dtype)
        vp_scr[...] = v.astype(vp_scr.dtype)

    # ---- Q projection for this tile (residual kept in f32) ----
    xq = q_ref[...]
    q = lax.dot_general(xq.astype(compute_dtype), wq_ref[...], dn,
                        preferred_element_type=f32) + bq_ref[...]
    # fold 1/sqrt(d_k) into q once instead of scaling every (TQ, Skv) score tile
    q = (q * scale).astype(compute_dtype)

    masked = mask_ref[...].astype(jnp.int32) != 0          # (TQ, Skv), shared by heads

    # ---- per-head attention; heads are static lane slices of packed projections ----
    # TODO(synk): head-batched dot_general (H,TQ,d_k layout) would remove the
    # per-head lane-slice relayouts, at the cost of in-kernel 3-D transposes.
    for h in range(n_heads):
        qh = q[:, h * d_k:(h + 1) * d_k]                    # (TQ,  d_k)
        kh = kp_scr[:, h * d_k:(h + 1) * d_k]               # (Skv, d_k)  cached
        vh = vp_scr[:, h * d_v:(h + 1) * d_v]               # (Skv, d_v)  cached

        scores = lax.dot_general(qh, kh, dn, preferred_element_type=f32)
        scores = jnp.where(masked, f32(-1e9), scores)       # masked_fill_(-1e9)

        m = jnp.max(scores, axis=-1, keepdims=True)         # softmax kept in f32
        p = jnp.exp(scores - m)
        denom = jnp.sum(p, axis=-1, keepdims=True)
        attn = p * pl.reciprocal(denom, approx=True)        # EUP slot

        if attn_ref is not None:
            attn_ref[h] = attn.astype(attn_ref.dtype)
        ctx_h = jnp.dot(attn.astype(compute_dtype), vh, preferred_element_type=f32)
        ctx_scr[:, h * d_v:(h + 1) * d_v] = ctx_h.astype(ctx_scr.dtype)

    # ---- output projection + residual add + LayerNorm (biased var, torch eps) ----
    out = lax.dot_general(ctx_scr[...], wo_ref[...], dn,
                          preferred_element_type=f32) + bo_ref[...]
    x = out + xq.astype(f32)
    mean = jnp.mean(x, axis=-1, keepdims=True)
    xc = x - mean
    var = jnp.mean(xc * xc, axis=-1, keepdims=True)
    inv = lax.rsqrt(var + eps)
    out_ref[...] = (xc * inv * g_ref[...] + beta_ref[...]).astype(out_ref.dtype)


# --------------------------------- wrapper ------------------------------------
def multi_head_attention(Q, K, V, attn_mask, params, n_heads, d_k, d_v, *,
                         q_tile=None, matmul_dtype=jnp.bfloat16,
                         return_attn=True, attn_dtype=None):
    """Pallas forward matching the PyTorch MultiHeadAttention module.

    Q, K, V   : [B, S, d_model] float32
    attn_mask : [B, S_q, S_kv] bool/int (nonzero == masked)
    matmul_dtype : MXU feed dtype (default bfloat16, f32 accumulation);
                   None == strict f32 parity path.
    return_attn  : emit the [B, H, S_q, S_kv] attention probabilities (in
                   `attn_dtype`, default bf16 when matmul_dtype is bf16).
    Returns `out` or `(out, attn)`.
    """
    B, Sq, d_model = Q.shape
    Skv = K.shape[1]
    Hdk = n_heads * d_k
    Hdv = n_heads * d_v

    compute = jnp.dtype(jnp.float32) if matmul_dtype is None else jnp.dtype(matmul_dtype)
    attn_dt = (jnp.dtype(attn_dtype) if attn_dtype is not None
               else (jnp.dtype(jnp.float32) if matmul_dtype is None
                     else jnp.dtype(jnp.bfloat16)))
    act_b = compute.itemsize
    cmp_b = compute.itemsize
    attn_b = attn_dt.itemsize

    # ---- tile size from VMEM capacity; pad ragged Sq to a tile multiple ----
    if q_tile is None:
        q_tile = _choose_q_tile(Sq, Skv, d_model, Hdk, Hdv, n_heads,
                                act_b, cmp_b, attn_b, return_attn)
    else:
        q_tile = min(max(8, _round_up(int(q_tile), 8)), _round_up(Sq, 8))
    Sq_pad = _round_up(Sq, q_tile)
    if return_attn and attn_b == 2 and (Sq_pad // q_tile) > 1 and q_tile % 16:
        q_tile = _round_up(q_tile, 16)          # bf16 sub-block alignment
        Sq_pad = _round_up(Sq, q_tile)
    n_qt = Sq_pad // q_tile

    cap = _vmem_capacity_bytes()
    est = _vmem_estimate(q_tile, Skv, d_model, Hdk, Hdv, n_heads,
                         act_b, cmp_b, attn_b, return_attn)
    vmem_limit = int(min(int(cap * 0.9), max(32 * 1024 * 1024, int(est * 1.25))))

    # ---- pre-cast grid-invariant operands once in the wrapper (not per step) ----
    Kc = K.astype(compute)
    Vc = V.astype(compute)
    wq = params["w_q"].astype(compute)
    wk = params["w_k"].astype(compute)
    wv = params["w_v"].astype(compute)
    wo = params["w_o"].astype(compute)
    bq = params["b_q"].reshape(1, Hdk).astype(jnp.float32)
    bk = params["b_k"].reshape(1, Hdk).astype(jnp.float32)
    bv = params["b_v"].reshape(1, Hdv).astype(jnp.float32)
    bo = params["b_o"].reshape(1, d_model).astype(jnp.float32)
    g = params["ln_g"].reshape(1, d_model).astype(jnp.float32)
    beta = params["ln_b"].reshape(1, d_model).astype(jnp.float32)

    Qp = Q
    mask = attn_mask.astype(jnp.int8)        # 4x less mask DMA than int32
    if Sq_pad != Sq:
        Qp = jnp.pad(Qp, ((0, 0), (0, Sq_pad - Sq), (0, 0)))
        mask = jnp.pad(mask, ((0, 0), (0, Sq_pad - Sq), (0, 0)))

    # ---- cost estimate (roofline hint for the XLA scheduler) ----
    flops = 2 * B * (Sq_pad * d_model * Hdk
                     + Skv * d_model * (Hdk + Hdv)
                     + n_heads * Sq_pad * Skv * (d_k + d_v)
                     + Sq_pad * Hdv * d_model)
    transcendentals = B * n_heads * Sq_pad * Skv
    bytes_accessed = (4 * B * Sq_pad * d_model
                      + 2 * act_b * B * Skv * d_model
                      + B * Sq_pad * Skv
                      + cmp_b * ((2 * Hdk + Hdv) * d_model + d_model * Hdv)
                      + 4 * B * Sq_pad * d_model)
    if return_attn:
        bytes_accessed += attn_b * B * n_heads * Sq_pad * Skv
    cost = pl.CostEstimate(flops=int(flops), transcendentals=int(transcendentals),
                           bytes_accessed=int(bytes_accessed))

    kern = functools.partial(
        _fused_mha_kernel, n_heads=n_heads, d_k=d_k, d_v=d_v,
        scale=1.0 / math.sqrt(d_k), eps=1e-5,
        compute_dtype=compute, emit_attn=return_attn)

    out_shapes = [jax.ShapeDtypeStruct((B, Sq_pad, d_model), Q.dtype)]
    out_specs = [pl.BlockSpec((None, q_tile, d_model), lambda b, t: (b, t, 0))]
    if return_attn:
        out_shapes.append(jax.ShapeDtypeStruct((B, n_heads, Sq_pad, Skv), attn_dt))
        out_specs.append(
            pl.BlockSpec((None, n_heads, q_tile, Skv), lambda b, t: (b, 0, t, 0)))

    # Grid-invariant operands (weights/biases/K/V) have constant index maps, so
    # the pipeline keeps them resident across the q-tile axis and DMAs them once.
    in_specs = [
        pl.BlockSpec((None, q_tile, d_model), lambda b, t: (b, t, 0)),   # Q tile (+residual)
        pl.BlockSpec((None, Skv, d_model), lambda b, t: (b, 0, 0)),      # K (resident over t)
        pl.BlockSpec((None, Skv, d_model), lambda b, t: (b, 0, 0)),      # V (resident over t)
        pl.BlockSpec((None, q_tile, Skv), lambda b, t: (b, t, 0)),       # mask tile (int8)
        pl.BlockSpec((Hdk, d_model), lambda b, t: (0, 0)),               # w_q
        pl.BlockSpec((1, Hdk), lambda b, t: (0, 0)),                     # b_q
        pl.BlockSpec((Hdk, d_model), lambda b, t: (0, 0)),               # w_k
        pl.BlockSpec((1, Hdk), lambda b, t: (0, 0)),                     # b_k
        pl.BlockSpec((Hdv, d_model), lambda b, t: (0, 0)),               # w_v
        pl.BlockSpec((1, Hdv), lambda b, t: (0, 0)),                     # b_v
        pl.BlockSpec((d_model, Hdv), lambda b, t: (0, 0)),               # w_o
        pl.BlockSpec((1, d_model), lambda b, t: (0, 0)),                 # b_o
        pl.BlockSpec((1, d_model), lambda b, t: (0, 0)),                 # ln_gamma
        pl.BlockSpec((1, d_model), lambda b, t: (0, 0)),                 # ln_beta
    ]

    scratch_shapes = [
        pltpu.VMEM((Skv, Hdk), compute),     # cached K projection
        pltpu.VMEM((Skv, Hdv), compute),     # cached V projection
        pltpu.VMEM((q_tile, Hdv), compute),  # lane-dense context
    ]

    results = pl.pallas_call(
        kern,
        out_shape=tuple(out_shapes) if return_attn else out_shapes[0],
        grid=(B, n_qt),
        in_specs=in_specs,
        out_specs=tuple(out_specs) if return_attn else out_specs[0],
        scratch_shapes=scratch_shapes,
        compiler_params=pltpu.CompilerParams(
            # batch axis independent (megacore-shardable); q-tile axis carries
            # the cached K/V projection scratch, so it must be "arbitrary".
            dimension_semantics=("parallel", "arbitrary"),
            vmem_limit_bytes=vmem_limit,
        ),
        cost_estimate=cost,
    )(Qp, Kc, Vc, mask, wq, bq, wk, bk, wv, bv, wo, bo, g, beta)

    if return_attn:
        out, attn = results
        if Sq_pad != Sq:
            out = out[:, :Sq]
            attn = attn[:, :, :Sq]
        return out, attn
    out = results
    if Sq_pad != Sq:
        out = out[:, :Sq]
    return out


# --------------------------------- parameters ----------------------------------
def init_params(key, d_model, d_k, d_v, n_heads):
    ks = jax.random.split(key, 8)
    s = 0.02
    return {
        "w_q": jax.random.normal(ks[0], (d_k * n_heads, d_model), jnp.float32) * s,
        "b_q": jax.random.normal(ks[1], (d_k * n_heads,), jnp.float32) * s,
        "w_k": jax.random.normal(ks[2], (d_k * n_heads, d_model), jnp.float32) * s,
        "b_k": jax.random.normal(ks[3], (d_k * n_heads,), jnp.float32) * s,
        "w_v": jax.random.normal(ks[4], (d_v * n_heads, d_model), jnp.float32) * s,
        "b_v": jax.random.normal(ks[5], (d_v * n_heads,), jnp.float32) * s,
        # The PyTorch forward creates fresh nn.Linear / nn.LayerNorm each call;
        # we use fixed deterministic parameters instead.
        "w_o": jax.random.normal(ks[6], (d_model, d_v * n_heads), jnp.float32) * s,
        "b_o": jax.random.normal(ks[7], (d_model,), jnp.float32) * s,
        "ln_g": jnp.ones((d_model,), jnp.float32),
        "ln_b": jnp.zeros((d_model,), jnp.float32),
    }


# -------------------------- pure-JAX reference (check) --------------------------
def _reference(Q, K, V, attn_mask, params, n_heads, d_k, d_v, eps=1e-5):
    B, S, d_model = Q.shape

    def lin(x, w, b):
        return x @ w.T + b

    q = lin(Q, params["w_q"], params["b_q"]).reshape(B, S, n_heads, d_k).transpose(0, 2, 1, 3)
    k = lin(K, params["w_k"], params["b_k"]).reshape(B, S, n_heads, d_k).transpose(0, 2, 1, 3)
    v = lin(V, params["w_v"], params["b_v"]).reshape(B, S, n_heads, d_v).transpose(0, 2, 1, 3)
    scores = jnp.einsum("bhqd,bhkd->bhqk", q, k) / math.sqrt(d_k)
    scores = jnp.where(attn_mask[:, None, :, :] != 0, -1e9, scores)
    attn = jax.nn.softmax(scores, axis=-1)
    ctx = jnp.einsum("bhqk,bhkd->bhqd", attn, v).transpose(0, 2, 1, 3).reshape(B, S, n_heads * d_v)
    out = lin(ctx, params["w_o"], params["b_o"]) + Q
    mean = out.mean(-1, keepdims=True)
    var = ((out - mean) ** 2).mean(-1, keepdims=True)
    out = (out - mean) * lax.rsqrt(var + eps) * params["ln_g"] + params["ln_b"]
    return out, attn


if __name__ == "__main__":
    # Small shapes consistent with the module's forward.
    B, S = 2, 8
    d_model, n_heads, d_k, d_v = 32, 4, 8, 8

    key = jax.random.PRNGKey(0)
    k_in, k_mask, k_par = jax.random.split(key, 3)

    Q = jax.random.normal(k_in, (B, S, d_model), jnp.float32)
    K = Q
    V = Q
    # boolean attention mask [B, S_q, S_k]: True == masked (filled with -1e9)
    key_pad = jax.random.bernoulli(k_mask, 0.2, (B, 1, S))
    attn_mask = jnp.broadcast_to(key_pad, (B, S, S))

    params = init_params(k_par, d_model, d_k, d_v, n_heads)
    out_ref, attn_ref = _reference(Q, K, V, attn_mask, params, n_heads, d_k, d_v)

    # Default path: bf16 MXU feed (f32 accumulation), bf16 attention output.
    out, attn = multi_head_attention(Q, K, V, attn_mask, params, n_heads, d_k, d_v)
    jax.block_until_ready((out, attn))
    assert out.shape == (B, S, d_model)
    assert attn.shape == (B, n_heads, S, S)
    assert jnp.allclose(out, out_ref, atol=2e-2, rtol=2e-2)
    assert jnp.allclose(attn.astype(jnp.float32), attn_ref, atol=2e-2, rtol=2e-2)

    # Strict f32 parity path.
    out32, attn32 = multi_head_attention(Q, K, V, attn_mask, params, n_heads, d_k, d_v,
                                         matmul_dtype=None)
    jax.block_until_ready((out32, attn32))
    assert jnp.allclose(out32, out_ref, atol=1e-2, rtol=1e-2)
    assert jnp.allclose(attn32, attn_ref, atol=1e-2, rtol=1e-2)

    # Attention-probability output is optional (skips the dominant HBM writeback).
    out_only = multi_head_attention(Q, K, V, attn_mask, params, n_heads, d_k, d_v,
                                    return_attn=False)
    jax.block_until_ready(out_only)
    assert out_only.shape == (B, S, d_model)
    assert jnp.allclose(out_only, out_ref, atol=2e-2, rtol=2e-2)

    print("KERNEL_OK")
</pallas_src>

<mosaic_0001>
module attributes {stable_mosaic.version = 11 : i64} {
  func.func @_fused_mha_kernel(%arg0: i32, %arg1: i32, %arg2: memref<1x8x32xf32, #tpu.memory_space<vmem>>, %arg3: memref<1x8x32xbf16, #tpu.memory_space<vmem>>, %arg4: memref<1x8x32xbf16, #tpu.memory_space<vmem>>, %arg5: memref<1x8x8xi8, #tpu.memory_space<vmem>>, %arg6: memref<32x32xbf16, #tpu.memory_space<vmem>>, %arg7: memref<1x32xf32, #tpu.memory_space<vmem>>, %arg8: memref<32x32xbf16, #tpu.memory_space<vmem>>, %arg9: memref<1x32xf32, #tpu.memory_space<vmem>>, %arg10: memref<32x32xbf16, #tpu.memory_space<vmem>>, %arg11: memref<1x32xf32, #tpu.memory_space<vmem>>, %arg12: memref<32x32xbf16, #tpu.memory_space<vmem>>, %arg13: memref<1x32xf32, #tpu.memory_space<vmem>>, %arg14: memref<1x32xf32, #tpu.memory_space<vmem>>, %arg15: memref<1x32xf32, #tpu.memory_space<vmem>>, %arg16: memref<1x8x32xf32, #tpu.memory_space<vmem>>, %arg17: memref<1x4x8x8xbf16, #tpu.memory_space<vmem>>, %arg18: memref<8x32xbf16, #tpu.memory_space<vmem>>, %arg19: memref<8x32xbf16, #tpu.memory_space<vmem>>, %arg20: memref<8x32xbf16, #tpu.memory_space<vmem>>) attributes {dimension_semantics = [#tpu.dimension_semantics<parallel>, #tpu.dimension_semantics<arbitrary>], iteration_bounds = array<i64: 2, 1>, scalar_prefetch = 0 : i64, scratch_operands = 3 : i64, tpu.core_type = #tpu.core_type<tc>, window_params = [{transform_indices = @transform_0, window_bounds = array<i64: 1, 8, 32>}, {transform_indices = @transform_1, window_bounds = array<i64: 1, 8, 32>}, {transform_indices = @transform_2, window_bounds = array<i64: 1, 8, 32>}, {transform_indices = @transform_3, window_bounds = array<i64: 1, 8, 8>}, {pipeline_mode = #tpu.pipeline_mode<synchronous>, transform_indices = @transform_4, window_bounds = array<i64: 32, 32>}, {pipeline_mode = #tpu.pipeline_mode<synchronous>, transform_indices = @transform_5, window_bounds = array<i64: 1, 32>}, {pipeline_mode = #tpu.pipeline_mode<synchronous>, transform_indices = @transform_6, window_bounds = array<i64: 32, 32>}, {pipeline_mode = #tpu.pipeline_mode<synchronous>, transform_indices = @transform_7, window_bounds = array<i64: 1, 32>}, {pipeline_mode = #tpu.pipeline_mode<synchronous>, transform_indices = @transform_8, window_bounds = array<i64: 32, 32>}, {pipeline_mode = #tpu.pipeline_mode<synchronous>, transform_indices = @transform_9, window_bounds = array<i64: 1, 32>}, {pipeline_mode = #tpu.pipeline_mode<synchronous>, transform_indices = @transform_10, window_bounds = array<i64: 32, 32>}, {pipeline_mode = #tpu.pipeline_mode<synchronous>, transform_indices = @transform_11, window_bounds = array<i64: 1, 32>}, {pipeline_mode = #tpu.pipeline_mode<synchronous>, transform_indices = @transform_12, window_bounds = array<i64: 1, 32>}, {pipeline_mode = #tpu.pipeline_mode<synchronous>, transform_indices = @transform_13, window_bounds = array<i64: 1, 32>}, {transform_indices = @transform_14, window_bounds = array<i64: 1, 8, 32>}, {transform_indices = @transform_15, window_bounds = array<i64: 1, 4, 8, 8>}]} {
    %c0_i32 = arith.constant 0 : i32
    %0 = arith.cmpi eq, %arg1, %c0_i32 : i32
    %1 = arith.extui %0 : i1 to i32
    %c0_i32_0 = arith.constant 0 : i32
    %2 = arith.cmpi ne, %1, %c0_i32_0 : i32
    scf.if %2 {
      %c0_85 = arith.constant 0 : index
      %c0_86 = arith.constant 0 : index
      %c0_87 = arith.constant 0 : index
      %147 = vector.load %arg3[%c0_85, %c0_86, %c0_87] : memref<1x8x32xbf16, #tpu.memory_space<vmem>>, vector<1x8x32xbf16>
      %148 = vector.shape_cast %147 : vector<1x8x32xbf16> to vector<8x32xbf16>
      %c0_88 = arith.constant 0 : index
      %c0_89 = arith.constant 0 : index
      %149 = vector.load %arg8[%c0_88, %c0_89] : memref<32x32xbf16, #tpu.memory_space<vmem>>, vector<32x32xbf16>
      %cst_90 = arith.constant dense<0.000000e+00> : vector<8x32xf32>
      %150 = tpu.matmul %148, %149, %cst_90 {dimension_numbers = #tpu.dot_dimension_numbers<[1], [1], [0], [0], [0, 0, 1, 0], [], []>} : vector<8x32xbf16>, vector<32x32xbf16>, vector<8x32xf32> -> vector<8x32xf32>
      %c0_91 = arith.constant 0 : index
      %c0_92 = arith.constant 0 : index
      %151 = vector.load %arg9[%c0_91, %c0_92] : memref<1x32xf32, #tpu.memory_space<vmem>>, vector<1x32xf32>
      %152 = vector.broadcast %151 : vector<1x32xf32> to vector<8x32xf32>
      %153 = arith.addf %150, %152 : vector<8x32xf32>
      %c0_93 = arith.constant 0 : index
      %c0_94 = arith.constant 0 : index
      %c0_95 = arith.constant 0 : index
      %154 = vector.load %arg4[%c0_93, %c0_94, %c0_95] : memref<1x8x32xbf16, #tpu.memory_space<vmem>>, vector<1x8x32xbf16>
      %155 = vector.shape_cast %154 : vector<1x8x32xbf16> to vector<8x32xbf16>
      %c0_96 = arith.constant 0 : index
      %c0_97 = arith.constant 0 : index
      %156 = vector.load %arg10[%c0_96, %c0_97] : memref<32x32xbf16, #tpu.memory_space<vmem>>, vector<32x32xbf16>
      %cst_98 = arith.constant dense<0.000000e+00> : vector<8x32xf32>
      %157 = tpu.matmul %155, %156, %cst_98 {dimension_numbers = #tpu.dot_dimension_numbers<[1], [1], [0], [0], [0, 0, 1, 0], [], []>} : vector<8x32xbf16>, vector<32x32xbf16>, vector<8x32xf32> -> vector<8x32xf32>
      %c0_99 = arith.constant 0 : index
      %c0_100 = arith.constant 0 : index
      %158 = vector.load %arg11[%c0_99, %c0_100] : memref<1x32xf32, #tpu.memory_space<vmem>>, vector<1x32xf32>
      %159 = vector.broadcast %158 : vector<1x32xf32> to vector<8x32xf32>
      %160 = arith.addf %157, %159 : vector<8x32xf32>
      %161 = arith.truncf %153 : vector<8x32xf32> to vector<8x32xbf16>
      %c0_101 = arith.constant 0 : index
      %c0_102 = arith.constant 0 : index
      %162 = vector.load %arg18[%c0_101, %c0_102] : memref<8x32xbf16, #tpu.memory_space<vmem>>, vector<8x32xbf16>
      tpu.vector_store %arg18[%c0_101, %c0_102], %161 {strides = array<i32>} : memref<8x32xbf16, #tpu.memory_space<vmem>>, vector<8x32xbf16>,
      %163 = arith.truncf %160 : vector<8x32xf32> to vector<8x32xbf16>
      %c0_103 = arith.constant 0 : index
      %c0_104 = arith.constant 0 : index
      %164 = vector.load %arg19[%c0_103, %c0_104] : memref<8x32xbf16, #tpu.memory_space<vmem>>, vector<8x32xbf16>
      tpu.vector_store %arg19[%c0_103, %c0_104], %163 {strides = array<i32>} : memref<8x32xbf16, #tpu.memory_space<vmem>>, vector<8x32xbf16>,
    } else {
    }
    %c0 = arith.constant 0 : index
    %c0_1 = arith.constant 0 : index
    %c0_2 = arith.constant 0 : index
    %3 = vector.load %arg2[%c0, %c0_1, %c0_2] : memref<1x8x32xf32, #tpu.memory_space<vmem>>, vector<1x8x32xf32>
    %4 = vector.shape_cast %3 : vector<1x8x32xf32> to vector<8x32xf32>
    %5 = arith.truncf %4 : vector<8x32xf32> to vector<8x32xbf16>
    %c0_3 = arith.constant 0 : index
    %c0_4 = arith.constant 0 : index
    %6 = vector.load %arg6[%c0_3, %c0_4] : memref<32x32xbf16, #tpu.memory_space<vmem>>, vector<32x32xbf16>
    %cst = arith.constant dense<0.000000e+00> : vector<8x32xf32>
    %7 = tpu.matmul %5, %6, %cst {dimension_numbers = #tpu.dot_dimension_numbers<[1], [1], [0], [0], [0, 0, 1, 0], [], []>} : vector<8x32xbf16>, vector<32x32xbf16>, vector<8x32xf32> -> vector<8x32xf32>
    %c0_5 = arith.constant 0 : index
    %c0_6 = arith.constant 0 : index
    %8 = vector.load %arg7[%c0_5, %c0_6] : memref<1x32xf32, #tpu.memory_space<vmem>>, vector<1x32xf32>
    %9 = vector.broadcast %8 : vector<1x32xf32> to vector<8x32xf32>
    %10 = arith.addf %7, %9 : vector<8x32xf32>
    %cst_7 = arith.constant 0.353553385 : f32
    %11 = vector.broadcast %cst_7 : f32 to vector<8x32xf32>
    %12 = arith.mulf %10, %11 : vector<8x32xf32>
    %13 = arith.truncf %12 : vector<8x32xf32> to vector<8x32xbf16>
    %c0_8 = arith.constant 0 : index
    %c0_9 = arith.constant 0 : index
    %c0_10 = arith.constant 0 : index
    %14 = vector.load %arg5[%c0_8, %c0_9, %c0_10] : memref<1x8x8xi8, #tpu.memory_space<vmem>>, vector<1x8x8xi8>
    %15 = vector.shape_cast %14 : vector<1x8x8xi8> to vector<8x8xi8>
    %16 = arith.extsi %15 : vector<8x8xi8> to vector<8x8xi32>
    %c0_i32_11 = arith.constant 0 : i32
    %17 = vector.broadcast %c0_i32_11 : i32 to vector<8x8xi32>
    %18 = arith.cmpi ne, %16, %17 : vector<8x8xi32>
    %19 = vector.extract_strided_slice %13 {offsets = [0, 0], sizes = [8, 8], strides = [1, 1]} : vector<8x32xbf16> to vector<8x8xbf16>
    %c0_12 = arith.constant 0 : index
    %c0_13 = arith.constant 0 : index
    %20 = vector.load %arg18[%c0_12, %c0_13] : memref<8x32xbf16, #tpu.memory_space<vmem>>, vector<8x8xbf16>
    %c0_14 = arith.constant 0 : index
    %c0_15 = arith.constant 0 : index
    %21 = vector.load %arg19[%c0_14, %c0_15] : memref<8x32xbf16, #tpu.memory_space<vmem>>, vector<8x8xbf16>
    %cst_16 = arith.constant dense<0.000000e+00> : vector<8x8xf32>
    %22 = tpu.matmul %19, %20, %cst_16 {dimension_numbers = #tpu.dot_dimension_numbers<[1], [1], [0], [0], [0, 0, 1, 0], [], []>} : vector<8x8xbf16>, vector<8x8xbf16>, vector<8x8xf32> -> vector<8x8xf32>
    %cst_17 = arith.constant -1.000000e+09 : f32
    %23 = vector.broadcast %cst_17 : f32 to vector<8x8xf32>
    %24 = arith.select %18, %23, %22 : vector<8x8xi1>, vector<8x8xf32>
    %cst_18 = arith.constant dense<0xFF800000> : vector<8xf32>
    %25 = vector.multi_reduction <maximumf>, %24, %cst_18 [1] : vector<8x8xf32> to vector<8xf32>
    %26 = vector.shape_cast %25 : vector<8xf32> to vector<8x1xf32>
    %27 = vector.broadcast %26 : vector<8x1xf32> to vector<8x8xf32>
    %28 = arith.subf %24, %27 : vector<8x8xf32>
    %29 = math.exp %28 : vector<8x8xf32>
    %cst_19 = arith.constant dense<0.000000e+00> : vector<8xf32>
    %30 = vector.multi_reduction <add>, %29, %cst_19 [1] : vector<8x8xf32> to vector<8xf32>
    %31 = vector.shape_cast %30 : vector<8xf32> to vector<8x1xf32>
    %32 = tpu.reciprocal %31 {approx = true} : vector<8x1xf32> -> vector<8x1xf32>
    %33 = vector.broadcast %32 : vector<8x1xf32> to vector<8x8xf32>
    %34 = arith.mulf %29, %33 : vector<8x8xf32>
    %35 = arith.truncf %34 : vector<8x8xf32> to vector<8x8xbf16>
    %c0_20 = arith.constant 0 : index
    %c0_21 = arith.constant 0 : index
    %c0_22 = arith.constant 0 : index
    %c0_23 = arith.constant 0 : index
    %36 = vector.load %arg17[%c0_20, %c0_21, %c0_22, %c0_23] : memref<1x4x8x8xbf16, #tpu.memory_space<vmem>>, vector<1x1x8x8xbf16>
    %37 = vector.shape_cast %36 : vector<1x1x8x8xbf16> to vector<8x8xbf16>
    %38 = vector.shape_cast %35 : vector<8x8xbf16> to vector<1x1x8x8xbf16>
    tpu.vector_store %arg17[%c0_20, %c0_21, %c0_22, %c0_23], %38 {strides = array<i32>} : memref<1x4x8x8xbf16, #tpu.memory_space<vmem>>, vector<1x1x8x8xbf16>,
    %39 = arith.truncf %34 : vector<8x8xf32> to vector<8x8xbf16>
    %cst_24 = arith.constant dense<0.000000e+00> : vector<8x8xf32>
    %40 = tpu.matmul %39, %21, %cst_24 {dimension_numbers = #tpu.dot_dimension_numbers<[1], [0], [0], [1], [0, 0, 1, 1], [], []>} : vector<8x8xbf16>, vector<8x8xbf16>, vector<8x8xf32> -> vector<8x8xf32>
    %41 = arith.truncf %40 : vector<8x8xf32> to vector<8x8xbf16>
    %c0_25 = arith.constant 0 : index
    %c0_26 = arith.constant 0 : index
    %42 = vector.load %arg20[%c0_25, %c0_26] : memref<8x32xbf16, #tpu.memory_space<vmem>>, vector<8x8xbf16>
    tpu.vector_store %arg20[%c0_25, %c0_26], %41 {strides = array<i32>} : memref<8x32xbf16, #tpu.memory_space<vmem>>, vector<8x8xbf16>,
    %43 = vector.extract_strided_slice %13 {offsets = [0, 8], sizes = [8, 8], strides = [1, 1]} : vector<8x32xbf16> to vector<8x8xbf16>
    %c0_27 = arith.constant 0 : index
    %c8 = arith.constant 8 : index
    %44 = vector.load %arg18[%c0_27, %c8] : memref<8x32xbf16, #tpu.memory_space<vmem>>, vector<8x8xbf16>
    %c0_28 = arith.constant 0 : index
    %c8_29 = arith.constant 8 : index
    %45 = vector.load %arg19[%c0_28, %c8_29] : memref<8x32xbf16, #tpu.memory_space<vmem>>, vector<8x8xbf16>
    %cst_30 = arith.constant dense<0.000000e+00> : vector<8x8xf32>
    %46 = tpu.matmul %43, %44, %cst_30 {dimension_numbers = #tpu.dot_dimension_numbers<[1], [1], [0], [0], [0, 0, 1, 0], [], []>} : vector<8x8xbf16>, vector<8x8xbf16>, vector<8x8xf32> -> vector<8x8xf32>
    %cst_31 = arith.constant -1.000000e+09 : f32
    %47 = vector.broadcast %cst_31 : f32 to vector<8x8xf32>
    %48 = arith.select %18, %47, %46 : vector<8x8xi1>, vector<8x8xf32>
    %cst_32 = arith.constant dense<0xFF800000> : vector<8xf32>
    %49 = vector.multi_reduction <maximumf>, %48, %cst_32 [1] : vector<8x8xf32> to vector<8xf32>
    %50 = vector.shape_cast %49 : vector<8xf32> to vector<8x1xf32>
    %51 = vector.broadcast %50 : vector<8x1xf32> to vector<8x8xf32>
    %52 = arith.subf %48, %51 : vector<8x8xf32>
    %53 = math.exp %52 : vector<8x8xf32>
    %cst_33 = arith.constant dense<0.000000e+00> : vector<8xf32>
    %54 = vector.multi_reduction <add>, %53, %cst_33 [1] : vector<8x8xf32> to vector<8xf32>
    %55 = vector.shape_cast %54 : vector<8xf32> to vector<8x1xf32>
    %56 = tpu.reciprocal %55 {approx = true} : vector<8x1xf32> -> vector<8x1xf32>
    %57 = vector.broadcast %56 : vector<8x1xf32> to vector<8x8xf32>
    %58 = arith.mulf %53, %57 : vector<8x8xf32>
    %59 = arith.truncf %58 : vector<8x8xf32> to vector<8x8xbf16>
    %c0_34 = arith.constant 0 : index
    %c1 = arith.constant 1 : index
    %c0_35 = arith.constant 0 : index
    %c0_36 = arith.constant 0 : index
    %60 = vector.load %arg17[%c0_34, %c1, %c0_35, %c0_36] : memref<1x4x8x8xbf16, #tpu.memory_space<vmem>>, vector<1x1x8x8xbf16>
    %61 = vector.shape_cast %60 : vector<1x1x8x8xbf16> to vector<8x8xbf16>
    %62 = vector.shape_cast %59 : vector<8x8xbf16> to vector<1x1x8x8xbf16>
    tpu.vector_store %arg17[%c0_34, %c1, %c0_35, %c0_36], %62 {strides = array<i32>} : memref<1x4x8x8xbf16, #tpu.memory_space<vmem>>, vector<1x1x8x8xbf16>,
    %63 = arith.truncf %58 : vector<8x8xf32> to vector<8x8xbf16>
    %cst_37 = arith.constant dense<0.000000e+00> : vector<8x8xf32>
    %64 = tpu.matmul %63, %45, %cst_37 {dimension_numbers = #tpu.dot_dimension_numbers<[1], [0], [0], [1], [0, 0, 1, 1], [], []>} : vector<8x8xbf16>, vector<8x8xbf16>, vector<8x8xf32> -> vector<8x8xf32>
    %65 = arith.truncf %64 : vector<8x8xf32> to vector<8x8xbf16>
    %c0_38 = arith.constant 0 : index
    %c8_39 = arith.constant 8 : index
    %66 = vector.load %arg20[%c0_38, %c8_39] : memref<8x32xbf16, #tpu.memory_space<vmem>>, vector<8x8xbf16>
    tpu.vector_store %arg20[%c0_38, %c8_39], %65 {strides = array<i32>} : memref<8x32xbf16, #tpu.memory_space<vmem>>, vector<8x8xbf16>,
    %67 = vector.extract_strided_slice %13 {offsets = [0, 16], sizes = [8, 8], strides = [1, 1]} : vector<8x32xbf16> to vector<8x8xbf16>
    %c0_40 = arith.constant 0 : index
    %c16 = arith.constant 16 : index
    %68 = vector.load %arg18[%c0_40, %c16] : memref<8x32xbf16, #tpu.memory_space<vmem>>, vector<8x8xbf16>
    %c0_41 = arith.constant 0 : index
    %c16_42 = arith.constant 16 : index
    %69 = vector.load %arg19[%c0_41, %c16_42] : memref<8x32xbf16, #tpu.memory_space<vmem>>, vector<8x8xbf16>
    %cst_43 = arith.constant dense<0.000000e+00> : vector<8x8xf32>
    %70 = tpu.matmul %67, %68, %cst_43 {dimension_numbers = #tpu.dot_dimension_numbers<[1], [1], [0], [0], [0, 0, 1, 0], [], []>} : vector<8x8xbf16>, vector<8x8xbf16>, vector<8x8xf32> -> vector<8x8xf32>
    %cst_44 = arith.constant -1.000000e+09 : f32
    %71 = vector.broadcast %cst_44 : f32 to vector<8x8xf32>
    %72 = arith.select %18, %71, %70 : vector<8x8xi1>, vector<8x8xf32>
    %cst_45 = arith.constant dense<0xFF800000> : vector<8xf32>
    %73 = vector.multi_reduction <maximumf>, %72, %cst_45 [1] : vector<8x8xf32> to vector<8xf32>
    %74 = vector.shape_cast %73 : vector<8xf32> to vector<8x1xf32>
    %75 = vector.broadcast %74 : vector<8x1xf32> to vector<8x8xf32>
    %76 = arith.subf %72, %75 : vector<8x8xf32>
    %77 = math.exp %76 : vector<8x8xf32>
    %cst_46 = arith.constant dense<0.000000e+00> : vector<8xf32>
    %78 = vector.multi_reduction <add>, %77, %cst_46 [1] : vector<8x8xf32> to vector<8xf32>
    %79 = vector.shape_cast %78 : vector<8xf32> to vector<8x1xf32>
    %80 = tpu.reciprocal %79 {approx = true} : vector<8x1xf32> -> vector<8x1xf32>
    %81 = vector.broadcast %80 : vector<8x1xf32> to vector<8x8xf32>
    %82 = arith.mulf %77, %81 : vector<8x8xf32>
    %83 = arith.truncf %82 : vector<8x8xf32> to vector<8x8xbf16>
    %c0_47 = arith.constant 0 : index
    %c2 = arith.constant 2 : index
    %c0_48 = arith.constant 0 : index
    %c0_49 = arith.constant 0 : index
    %84 = vector.load %arg17[%c0_47, %c2, %c0_48, %c0_49] : memref<1x4x8x8xbf16, #tpu.memory_space<vmem>>, vector<1x1x8x8xbf16>
    %85 = vector.shape_cast %84 : vector<1x1x8x8xbf16> to vector<8x8xbf16>
    %86 = vector.shape_cast %83 : vector<8x8xbf16> to vector<1x1x8x8xbf16>
    tpu.vector_store %arg17[%c0_47, %c2, %c0_48, %c0_49], %86 {strides = array<i32>} : memref<1x4x8x8xbf16, #tpu.memory_space<vmem>>, vector<1x1x8x8xbf16>,
    %87 = arith.truncf %82 : vector<8x8xf32> to vector<8x8xbf16>
    %cst_50 = arith.constant dense<0.000000e+00> : vector<8x8xf32>
    %88 = tpu.matmul %87, %69, %cst_50 {dimension_numbers = #tpu.dot_dimension_numbers<[1], [0], [0], [1], [0, 0, 1, 1], [], []>} : vector<8x8xbf16>, vector<8x8xbf16>, vector<8x8xf32> -> vector<8x8xf32>
    %89 = arith.truncf %88 : vector<8x8xf32> to vector<8x8xbf16>
    %c0_51 = arith.constant 0 : index
    %c16_52 = arith.constant 16 : index
    %90 = vector.load %arg20[%c0_51, %c16_52] : memref<8x32xbf16, #tpu.memory_space<vmem>>, vector<8x8xbf16>
    tpu.vector_store %arg20[%c0_51, %c16_52], %89 {strides = array<i32>} : memref<8x32xbf16, #tpu.memory_space<vmem>>, vector<8x8xbf16>,
    %91 = vector.extract_strided_slice %13 {offsets = [0, 24], sizes = [8, 8], strides = [1, 1]} : vector<8x32xbf16> to vector<8x8xbf16>
    %c0_53 = arith.constant 0 : index
    %c24 = arith.constant 24 : index
    %92 = vector.load %arg18[%c0_53, %c24] : memref<8x32xbf16, #tpu.memory_space<vmem>>, vector<8x8xbf16>
    %c0_54 = arith.constant 0 : index
    %c24_55 = arith.constant 24 : index
    %93 = vector.load %arg19[%c0_54, %c24_55] : memref<8x32xbf16, #tpu.memory_space<vmem>>, vector<8x8xbf16>
    %cst_56 = arith.constant dense<0.000000e+00> : vector<8x8xf32>
    %94 = tpu.matmul %91, %92, %cst_56 {dimension_numbers = #tpu.dot_dimension_numbers<[1], [1], [0], [0], [0, 0, 1, 0], [], []>} : vector<8x8xbf16>, vector<8x8xbf16>, vector<8x8xf32> -> vector<8x8xf32>
    %cst_57 = arith.constant -1.000000e+09 : f32
    %95 = vector.broadcast %cst_57 : f32 to vector<8x8xf32>
    %96 = arith.select %18, %95, %94 : vector<8x8xi1>, vector<8x8xf32>
    %cst_58 = arith.constant dense<0xFF800000> : vector<8xf32>
    %97 = vector.multi_reduction <maximumf>, %96, %cst_58 [1] : vector<8x8xf32> to vector<8xf32>
    %98 = vector.shape_cast %97 : vector<8xf32> to vector<8x1xf32>
    %99 = vector.broadcast %98 : vector<8x1xf32> to vector<8x8xf32>
    %100 = arith.subf %96, %99 : vector<8x8xf32>
    %101 = math.exp %100 : vector<8x8xf32>
    %cst_59 = arith.constant dense<0.000000e+00> : vector<8xf32>
    %102 = vector.multi_reduction <add>, %101, %cst_59 [1] : vector<8x8xf32> to vector<8xf32>
    %103 = vector.shape_cast %102 : vector<8xf32> to vector<8x1xf32>
    %104 = tpu.reciprocal %103 {approx = true} : vector<8x1xf32> -> vector<8x1xf32>
    %105 = vector.broadcast %104 : vector<8x1xf32> to vector<8x8xf32>
    %106 = arith.mulf %101, %105 : vector<8x8xf32>
    %107 = arith.truncf %106 : vector<8x8xf32> to vector<8x8xbf16>
    %c0_60 = arith.constant 0 : index
    %c3 = arith.constant 3 : index
    %c0_61 = arith.constant 0 : index
    %c0_62 = arith.constant 0 : index
    %108 = vector.load %arg17[%c0_60, %c3, %c0_61, %c0_62] : memref<1x4x8x8xbf16, #tpu.memory_space<vmem>>, vector<1x1x8x8xbf16>
    %109 = vector.shape_cast %108 : vector<1x1x8x8xbf16> to vector<8x8xbf16>
    %110 = vector.shape_cast %107 : vector<8x8xbf16> to vector<1x1x8x8xbf16>
    tpu.vector_store %arg17[%c0_60, %c3, %c0_61, %c0_62], %110 {strides = array<i32>} : memref<1x4x8x8xbf16, #tpu.memory_space<vmem>>, vector<1x1x8x8xbf16>,
    %111 = arith.truncf %106 : vector<8x8xf32> to vector<8x8xbf16>
    %cst_63 = arith.constant dense<0.000000e+00> : vector<8x8xf32>
    %112 = tpu.matmul %111, %93, %cst_63 {dimension_numbers = #tpu.dot_dimension_numbers<[1], [0], [0], [1], [0, 0, 1, 1], [], []>} : vector<8x8xbf16>, vector<8x8xbf16>, vector<8x8xf32> -> vector<8x8xf32>
    %113 = arith.truncf %112 : vector<8x8xf32> to vector<8x8xbf16>
    %c0_64 = arith.constant 0 : index
    %c24_65 = arith.constant 24 : index
    %114 = vector.load %arg20[%c0_64, %c24_65] : memref<8x32xbf16, #tpu.memory_space<vmem>>, vector<8x8xbf16>
    tpu.vector_store %arg20[%c0_64, %c24_65], %113 {strides = array<i32>} : memref<8x32xbf16, #tpu.memory_space<vmem>>, vector<8x8xbf16>,
    %c0_66 = arith.constant 0 : index
    %c0_67 = arith.constant 0 : index
    %115 = vector.load %arg20[%c0_66, %c0_67] : memref<8x32xbf16, #tpu.memory_space<vmem>>, vector<8x32xbf16>
    %c0_68 = arith.constant 0 : index
    %c0_69 = arith.constant 0 : index
    %116 = vector.load %arg12[%c0_68, %c0_69] : memref<32x32xbf16, #tpu.memory_space<vmem>>, vector<32x32xbf16>
    %cst_70 = arith.constant dense<0.000000e+00> : vector<8x32xf32>
    %117 = tpu.matmul %115, %116, %cst_70 {dimension_numbers = #tpu.dot_dimension_numbers<[1], [1], [0], [0], [0, 0, 1, 0], [], []>} : vector<8x32xbf16>, vector<32x32xbf16>, vector<8x32xf32> -> vector<8x32xf32>
    %c0_71 = arith.constant 0 : index
    %c0_72 = arith.constant 0 : index
    %118 = vector.load %arg13[%c0_71, %c0_72] : memref<1x32xf32, #tpu.memory_space<vmem>>, vector<1x32xf32>
    %119 = vector.broadcast %118 : vector<1x32xf32> to vector<8x32xf32>
    %120 = arith.addf %117, %119 : vector<8x32xf32>
    %121 = arith.addf %120, %4 : vector<8x32xf32>
    %cst_73 = arith.constant dense<0.000000e+00> : vector<8xf32>
    %122 = vector.multi_reduction <add>, %121, %cst_73 [1] : vector<8x32xf32> to vector<8xf32>
    %123 = vector.shape_cast %122 : vector<8xf32> to vector<8x1xf32>
    %cst_74 = arith.constant 3.200000e+01 : f32
    %124 = vector.broadcast %cst_74 : f32 to vector<8x1xf32>
    %125 = arith.divf %123, %124 : vector<8x1xf32>
    %126 = vector.broadcast %125 : vector<8x1xf32> to vector<8x32xf32>
    %127 = arith.subf %121, %126 : vector<8x32xf32>
    %128 = arith.mulf %127, %127 : vector<8x32xf32>
    %cst_75 = arith.constant dense<0.000000e+00> : vector<8xf32>
    %129 = vector.multi_reduction <add>, %128, %cst_75 [1] : vector<8x32xf32> to vector<8xf32>
    %130 = vector.shape_cast %129 : vector<8xf32> to vector<8x1xf32>
    %cst_76 = arith.constant 3.200000e+01 : f32
    %131 = vector.broadcast %cst_76 : f32 to vector<8x1xf32>
    %132 = arith.divf %130, %131 : vector<8x1xf32>
    %cst_77 = arith.constant 9.99999974E-6 : f32
    %133 = vector.broadcast %cst_77 : f32 to vector<8x1xf32>
    %134 = arith.addf %132, %133 : vector<8x1xf32>
    %135 = math.rsqrt %134 : vector<8x1xf32>
    %136 = vector.broadcast %135 : vector<8x1xf32> to vector<8x32xf32>
    %137 = arith.mulf %127, %136 : vector<8x32xf32>
    %c0_78 = arith.constant 0 : index
    %c0_79 = arith.constant 0 : index
    %138 = vector.load %arg14[%c0_78, %c0_79] : memref<1x32xf32, #tpu.memory_space<vmem>>, vector<1x32xf32>
    %139 = vector.broadcast %138 : vector<1x32xf32> to vector<8x32xf32>
    %140 = arith.mulf %137, %139 : vector<8x32xf32>
    %c0_80 = arith.constant 0 : index
    %c0_81 = arith.constant 0 : index
    %141 = vector.load %arg15[%c0_80, %c0_81] : memref<1x32xf32, #tpu.memory_space<vmem>>, vector<1x32xf32>
    %142 = vector.broadcast %141 : vector<1x32xf32> to vector<8x32xf32>
    %143 = arith.addf %140, %142 : vector<8x32xf32>
    %c0_82 = arith.constant 0 : index
    %c0_83 = arith.constant 0 : index
    %c0_84 = arith.constant 0 : index
    %144 = vector.load %arg16[%c0_82, %c0_83, %c0_84] : memref<1x8x32xf32, #tpu.memory_space<vmem>>, vector<1x8x32xf32>
    %145 = vector.shape_cast %144 : vector<1x8x32xf32> to vector<8x32xf32>
    %146 = vector.shape_cast %143 : vector<8x32xf32> to vector<1x8x32xf32>
    tpu.vector_store %arg16[%c0_82, %c0_83, %c0_84], %146 {strides = array<i32>} : memref<1x8x32xf32, #tpu.memory_space<vmem>>, vector<1x8x32xf32>,
    return
  }
  func.func @transform_0(%arg0: i32, %arg1: i32) -> (i32, i32, i32) {
    %c0_i32 = arith.constant 0 : i32
    %c0_i32_0 = arith.constant 0 : i32
    return %arg0, %arg1, %c0_i32 : i32, i32, i32
  }
  func.func @transform_1(%arg0: i32, %arg1: i32) -> (i32, i32, i32) {
    %c0_i32 = arith.constant 0 : i32
    %c0_i32_0 = arith.constant 0 : i32
    %c0_i32_1 = arith.constant 0 : i32
    return %arg0, %c0_i32, %c0_i32_0 : i32, i32, i32
  }
  func.func @transform_2(%arg0: i32, %arg1: i32) -> (i32, i32, i32) {
    %c0_i32 = arith.constant 0 : i32
    %c0_i32_0 = arith.constant 0 : i32
    %c0_i32_1 = arith.constant 0 : i32
    return %arg0, %c0_i32, %c0_i32_0 : i32, i32, i32
  }
  func.func @transform_3(%arg0: i32, %arg1: i32) -> (i32, i32, i32) {
    %c0_i32 = arith.constant 0 : i32
    %c0_i32_0 = arith.constant 0 : i32
    return %arg0, %arg1, %c0_i32 : i32, i32, i32
  }
  func.func @transform_4(%arg0: i32, %arg1: i32) -> (i32, i32) {
    %c0_i32 = arith.constant 0 : i32
    %c0_i32_0 = arith.constant 0 : i32
    %c0_i32_1 = arith.constant 0 : i32
    return %c0_i32, %c0_i32_0 : i32, i32
  }
  func.func @transform_5(%arg0: i32, %arg1: i32) -> (i32, i32) {
    %c0_i32 = arith.constant 0 : i32
    %c0_i32_0 = arith.constant 0 : i32
    %c0_i32_1 = arith.constant 0 : i32
    return %c0_i32, %c0_i32_0 : i32, i32
  }
  func.func @transform_6(%arg0: i32, %arg1: i32) -> (i32, i32) {
    %c0_i32 = arith.constant 0 : i32
    %c0_i32_0 = arith.constant 0 : i32
    %c0_i32_1 = arith.constant 0 : i32
    return %c0_i32, %c0_i32_0 : i32, i32
  }
  func.func @transform_7(%arg0: i32, %arg1: i32) -> (i32, i32) {
    %c0_i32 = arith.constant 0 : i32
    %c0_i32_0 = arith.constant 0 : i32
    %c0_i32_1 = arith.constant 0 : i32
    return %c0_i32, %c0_i32_0 : i32, i32
  }
  func.func @transform_8(%arg0: i32, %arg1: i32) -> (i32, i32) {
    %c0_i32 = arith.constant 0 : i32
    %c0_i32_0 = arith.constant 0 : i32
    %c0_i32_1 = arith.constant 0 : i32
    return %c0_i32, %c0_i32_0 : i32, i32
  }
  func.func @transform_9(%arg0: i32, %arg1: i32) -> (i32, i32) {
    %c0_i32 = arith.constant 0 : i32
    %c0_i32_0 = arith.constant 0 : i32
    %c0_i32_1 = arith.constant 0 : i32
    return %c0_i32, %c0_i32_0 : i32, i32
  }
  func.func @transform_10(%arg0: i32, %arg1: i32) -> (i32, i32) {
    %c0_i32 = arith.constant 0 : i32
    %c0_i32_0 = arith.constant 0 : i32
    %c0_i32_1 = arith.constant 0 : i32
    return %c0_i32, %c0_i32_0 : i32, i32
  }
  func.func @transform_11(%arg0: i32, %arg1: i32) -> (i32, i32) {
    %c0_i32 = arith.constant 0 : i32
    %c0_i32_0 = arith.constant 0 : i32
    %c0_i32_1 = arith.constant 0 : i32
    return %c0_i32, %c0_i32_0 : i32, i32
  }
  func.func @transform_12(%arg0: i32, %arg1: i32) -> (i32, i32) {
    %c0_i32 = arith.constant 0 : i32
    %c0_i32_0 = arith.constant 0 : i32
    %c0_i32_1 = arith.constant 0 : i32
    return %c0_i32, %c0_i32_0 : i32, i32
  }
  func.func @transform_13(%arg0: i32, %arg1: i32) -> (i32, i32) {
    %c0_i32 = arith.constant 0 : i32
    %c0_i32_0 = arith.constant 0 : i32
    %c0_i32_1 = arith.constant 0 : i32
    return %c0_i32, %c0_i32_0 : i32, i32
  }
  func.func @transform_14(%arg0: i32, %arg1: i32) -> (i32, i32, i32) {
    %c0_i32 = arith.constant 0 : i32
    %c0_i32_0 = arith.constant 0 : i32
    return %arg0, %arg1, %c0_i32 : i32, i32, i32
  }
  func.func @transform_15(%arg0: i32, %arg1: i32) -> (i32, i32, i32, i32) {
    %c0_i32 = arith.constant 0 : i32
    %c0_i32_0 = arith.constant 0 : i32
    %c0_i32_1 = arith.constant 0 : i32
    return %arg0, %c0_i32, %arg1, %c0_i32_0 : i32, i32, i32, i32
  }
}

</mosaic_0001>

<bundles_post_ra>
// kernel: tpu_custom_call.1
= control target key start
LH: loop header
LB: loop body
LE: loop exit
PB: predicated region body
PF: predicated region fallthrough
CT: control target
= control target key end

     0   :  { %s3053_s0 = inlined_call_operand.hbm [shape: f32[2,8,32], index: 0, kind: input, shape index: {}]   ;;  %s3054_s1 = inlined_call_operand.hbm [shape: bf16[2,8,32], index: 1, kind: input, shape index: {}]   ;;  %s3055_s2 = inlined_call_operand.hbm [shape: bf16[2,8,32], index: 2, kind: input, shape index: {}]   ;;  %s3056_s3 = inlined_call_operand.hbm [shape: s8[2,8,8], index: 3, kind: input, shape index: {}]   ;;  %s3057_s4 = inlined_call_operand.hbm [shape: bf16[32,32], index: 4, kind: input, shape index: {}]   ;;  %s3058_s5 = inlined_call_operand.vmem [shape: f32[1,32], index: 5, kind: input, shape index: {}]   ;;  %s3059_s6 = inlined_call_operand.hbm [shape: bf16[32,32], index: 6, kind: input, shape index: {}]   ;;  %s3060_s7 = inlined_call_operand.vmem [shape: f32[1,32], index: 7, kind: input, shape index: {}]   ;;  %s3061_s8 = inlined_call_operand.hbm [shape: bf16[32,32], index: 8, kind: input, shape index: {}]   ;;  %s3062_s9 = inlined_call_operand.hbm [shape: f32[1,32], index: 9, kind: input, shape index: {}]   ;;  %s3063_s10 = inlined_call_operand.vmem [shape: bf16[32,32], index: 10, kind: input, shape index: {}]   ;;  %s3064_s11 = inlined_call_operand.vmem [shape: f32[1,32], index: 11, kind: input, shape index: {}]   ;;  %s3065_s12 = inlined_call_operand.vmem [shape: f32[1,32], index: 12, kind: input, shape index: {}]   ;;  %s3066_s13 = inlined_call_operand.vmem [shape: f32[1,32], index: 13, kind: input, shape index: {}]   ;;  %s3067_s14 = inlined_call_operand.hbm [shape: f32[2,8,32], index: 14, kind: output, shape index: {0}]   ;;  %s3068_s15 = inlined_call_operand.hbm [shape: bf16[2,4,8,8], index: 15, kind: output, shape index: {1}]  }
   0x1   :  { %3085 = sst [smem:[#allocation37_spill]] %s3054_s1 }
   0x2   :  { %3086 = sst [smem:[#allocation38_spill]] %s3055_s2 }
   0x3   :  { %3087 = sst [smem:[#allocation39_spill]] %s3057_s4 }
   0x4   :  { %3088 = sst [smem:[#allocation40_spill]] %s3059_s6 }
   0x5   :  { %3089 = sst [smem:[#allocation41_spill]] %s3061_s8 }
   0x6   :  { %3090 = sst [smem:[#allocation42_spill]] %s3064_s11 }
   0x7   :  { %3091 = sst [smem:[#allocation43_spill]] %s3065_s12 }
   0x8   :  { %3092 = sst [smem:[#allocation44_spill]] %s3066_s13 }
   0x9   :  { %3093 = sst [smem:[#allocation45_spill]] %s3067_s14 }
   0xa   :  { %3094 = sst [smem:[#allocation46_spill]] %s3068_s15 }
   0xb   :  { %21 = vsyncpa [#allocation6], 0 }
   0xc   :  { %23 = vsyncpa [#allocation6 + $0x1], 0 }
   0xd   :  { %24 = vsyncpa [#allocation9], 0 }
   0xe   :  { %26 = vsyncpa [#allocation9 + $0x1], 0 }
   0xf   :  { %27 = vsyncpa [#allocation12], 0 }
  0x10   :  { %29 = vsyncpa [#allocation12 + $0x1], 0 }
  0x11   :  { %30 = vsyncpa [#allocation15], 0 }
  0x12   :  { %31 = vsyncpa [#allocation18], 0 }
  0x13   :  { %32 = vsyncpa [#allocation7], 0 }
  0x14   :  { %34 = vsyncpa [#allocation7 + $0x1], 0 }
  0x15   :  { %35 = vsyncpa [#allocation21], 0 }
  0x16   :  { %37 = vsyncpa [#allocation21 + $0x1], 0  ;;  %s2602_s18 = smov 0   ;;  %s2604_s19 = smov 0  }
  0x17   :  { %s2606_s20 = smov 0   ;;  %s2608_s21 = smov 0  }
  0x18   :  { %s2610_s22 = smov 0   ;;  %s2612_s23 = smov 0  }
  0x19 LB: > { %3095 = sst [smem:[#allocation30_spill]] %s2478_s18  ;;  %s2633_s24 = sadd.s32 4294967295, %s2498_s23   ;;  %s2498_s23 = sphi %s2612_s23, %s43_s23   ;;  %s2494_s22 = sphi %s2610_s22, %s3147_s22   ;;  %s2490_s21 = sphi %s2608_s21, %s3146_s21   ;;  %s2486_s20 = sphi %s2606_s20, %s3142_s20   ;;  %s2482_s19 = sphi %s2604_s19, %s3145_s19   ;;  %s2478_s18 = sphi %s2602_s18, %s3144_s18  }
  0x1a   : > { %3096 = sst [smem:[#allocation31_spill]] %s2486_s20  ;;  %s1802_s25 = sadd.s32 4294967294, %s2498_s23  }
  0x1b   : > { %3097 = sst [smem:[#allocation32_spill]] %s2490_s21  ;;  %p77_p0 = scmp.ne.s32.totalorder %s2482_s19, %s2478_s18 }
  0x1c   : > { %p3072_p1 = scmp.eq.s32.totalorder %s2633_s24, 0  ;;  %p393_p2 = scmp.eq.s32.totalorder %s2633_s24, 1 }
  0x1d   : > { %p399_p3 = scmp.eq.s32.totalorder %s1802_s25, 1  ;;  %p1803_p5 = scmp.ge.s32.totalorder %s2498_s23, 1 }
  0x1e   : > { %p2642_p4 = por %p3072_p1, %p77_p0  ;;  %p434_p7 = scmp.lt.s32.totalorder %s2498_s23, 3 }
  0x1f   : > { %p2647_p6 = por %p399_p3, %p77_p0  ;;  %s2500_s29 = smov [#allocation13]  }
  0x20   : > { %p2652_p8 = pnand %p1803_p5, %p434_p7  ;;  %s446_s30 = sshll.u32 %s2500_s29, 4  ;;  %s447_s30 = int_to_ptr.vmem [resolvable:$true] %s446_s30 }
  0x21   : > { %s3099_s27 = scalar_select %p2647_p6, 1, 0 }
  0x22   : > { %p2013_p9 = pneg %p2652_p8  ;;  %s2501_s17 = smov [#allocation14]  }
  0x23   : > { %3100 = sst [smem:[#allocation33_spill]] %s3099_s27  ;;  %s462_s25 = sshll.u32 %s2501_s17, 4  ;;  %s463_s25 = int_to_ptr.vmem [resolvable:$true] %s462_s25 }
  0x24   : > { %p2661_p11 = pnand %p2013_p9, %p3072_p1  ;;  %s2163_s27 = scalar_lea.vmem %s447_s30, 256 }
  0x25   : > { %p2164_p13 = scmp.ne.s32.totalorder %s447_s30, %s2163_s27  ;;  %p2171_p5 = scmp.lt.s32.totalorder %s447_s30, %s447_s30 }
  0x26   : > { %p3080_p12 = pneg %p2661_p11  ;;  %p2172_p7 = scmp.lt.s32.totalorder %s2163_s27, %s2163_s27 }
  0x28   : > { %p2166_p0 = pnand %p2164_p13, %p3080_p12  ;;  %p2173_p10 = por %p2172_p7, %p2171_p5 }
  0x2a   : > { %p2167_p3 = pneg %p2166_p0 }
  0x2c   : > { %p2174_p9 = pnand %p2173_p10, %p2167_p3 }
  0x2e   : > { %2177 = shalt.err (!%p2174_p9)
}
  0x2f   : > { %s3073_s29 = smov 64   ;;  %s3074_s18 = smov 4  }
  0x30   : > { %s3103_s4 = sld [smem:[#allocation39_spill]]  ;;  %s2189_s13 = scalar_lea.vmem %s463_s25, 256 }
  0x31   : > { %p2190_p13 = scmp.ne.s32.totalorder %s463_s25, %s2189_s13  ;;  %p2197_p10 = scmp.lt.s32.totalorder %s463_s25, %s463_s25 }
  0x32   : > { %p2198_p3 = scmp.lt.s32.totalorder %s2189_s13, %s2189_s13 }
  0x33   : > { %p2192_p0 = pnand %p2190_p13, %p3080_p12 }
  0x34   : > { %p2199_p7 = por %p2198_p3, %p2197_p10 }
  0x35   : > { %p2193_p5 = pneg %p2192_p0 }
  0x36   : > { %2016 = dma.hbm_to_vmem [thread:$0]  (!%p2661_p11), %s3103_s4, 256, %s447_s30, [#allocation12], %s3073_s29, %s3073_s29, %s3074_s18  }
  0x37   : > { %p2200_p9 = pnand %p2199_p7, %p2193_p5 }
  0x39   : > { %2203 = shalt.err (!%p2200_p9)
}
  0x3a   : > { %s3104_s6 = sld [smem:[#allocation40_spill]]  ;;  %s55_s13 = sadd.s32 1, %s2494_s22 }
  0x3b   : > { %s64_s14 = sadd.s32 1, %s2486_s20  ;;  %p57_p13 = scmp.ge.s32.totalorder %s55_s13, 2 }
  0x3c   : > { %p71_p0 = scmp.ne.s32.totalorder %s2486_s20, %s2482_s19  ;;  %p72_p5 = scmp.eq.s32.totalorder %s2498_s23, 0 }
  0x3d   : > { %p2050_p10 = scmp.lt.s32.totalorder %s2498_s23, 2  ;;  %s3149_s13 = smov (%p57_p13, %s55_s13), 0 }
  0x3e   : > { %3105 = sst [smem:[#allocation34_spill]] %s3149_s13  ;;  %p73_p3 = por %p72_p5, %p71_p0 }
  0x3f   : > { %p2699_p7 = por %p393_p2, %p71_p0  ;;  %s59_s30 = ssub.s32 %s2494_s22, %s3149_s13 }
  0x40   : > { %2019 = dma.hbm_to_vmem [thread:$0]  (!%p2661_p11), %s3104_s6, 256, %s463_s25, [#allocation15], %s3073_s29, %s3073_s29, %s3074_s18  }
  0x41   : > { %s3106_s12 = scalar_select %p2699_p7, 1, 0 }
  0x42   : > { %s2706_s25 = sand.u32 1, %s2486_s20   ;;  %p62_p9 = scmp.eq.s32.totalorder %s59_s30, 0 }
  0x43   : > { %3107 = sst [smem:[#allocation35_spill]] %s3106_s12  ;;  %p2708_p1 = pnand %p2050_p10, %p73_p3 }
  0x44   : > { %s3081_s27 = sand.u32 1, %s2498_s23   ;;  %s3082_s29 = sshll.u32 %s2706_s25, 2 }
  0x45   : > { %s2715_s18 = scalar_select %p62_p9, %s2486_s20, %s64_s14  }
  0x46   : > { %s1812_s4 = sshll.u32 %s2494_s22, 6  ;;  %s3110_s1 = sld [smem:[#allocation37_spill]] }
  0x47   : > { %3109 = sst [smem:[#allocation36_spill]] %s2715_s18  ;;  %s538_s12 = scalar_lea.vmem [#allocation8], %s3082_s29 }
  0x48   : > { %s545_s21 = sshll.u32 %s538_s12, 4  ;;  %s2725_s30 = scalar_lea.sflag [#allocation9], %s3081_s27  ;;  %s546_s21 = int_to_ptr.vmem [resolvable:$true] %s545_s21 }
  0x49   : > { %p3084_p2 = pneg %p2708_p1  ;;  %s2217_s11 = scalar_lea.vmem %s546_s21, 64 }
  0x4a   : > { %p2218_p13 = scmp.ne.s32.totalorder %s546_s21, %s2217_s11  ;;  %s2504_s14 = smov [#allocation8]  }
  0x4b   : > { %s2222_s18 = sshll.u32 %s2504_s14, 4  ;;  %s2223_s18 = int_to_ptr.vmem [resolvable:$false] %s2222_s18 }
  0x4c   : > { %s543_s13 = scalar_lea.hbm %s3110_s1, %s1812_s4  ;;  %p2220_p0 = pnand %p2218_p13, %p3084_p2 }
  0x4d   : > { %s2224_s6 = scalar_lea.vmem %s2223_s18, 128  ;;  %p2225_p10 = scmp.lt.s32.totalorder %s546_s21, %s2223_s18 }
  0x4e   : > { %p2221_p5 = pneg %p2220_p0  ;;  %p2226_p3 = scmp.lt.s32.totalorder %s2224_s6, %s2217_s11 }
  0x50   : > { %p2227_p9 = por %p2226_p3, %p2225_p10 }
  0x52   : > { %p2228_p12 = pnand %p2227_p9, %p2221_p5 }
  0x54   : > { %2231 = shalt.err (!%p2228_p12)
}
  0x55   : > { %2032 = dma.hbm_to_vmem [thread:$0]  (!%p2708_p1), %s543_s13, 64, %s546_s21, %s2725_s30  }
  0x56   : > { %s3111_s2 = sld [smem:[#allocation38_spill]]  ;;  %s2505_s29 = smov [#allocation16]  }
  0x57   : > { %s478_s1 = sshll.u32 %s2505_s29, 4  ;;  %s2506_s14 = smov [#allocation17]   ;;  %s479_s1 = int_to_ptr.vmem [resolvable:$true] %s478_s1 }
  0x58   : > { %s492_s20 = sshll.u32 %s2506_s14, 4  ;;  %s2243_s11 = scalar_lea.vmem %s479_s1, 256  ;;  %s493_s20 = int_to_ptr.vmem [resolvable:$true] %s492_s20 }
  0x59   : > { %p2244_p13 = scmp.ne.s32.totalorder %s479_s1, %s2243_s11  ;;  %p3112_p12 = pneg %p2661_p11 }
  0x5a   : > { %p2251_p10 = scmp.lt.s32.totalorder %s479_s1, %s479_s1  ;;  %p2252_p3 = scmp.lt.s32.totalorder %s2243_s11, %s2243_s11 }
  0x5b   : > { %p2246_p0 = pnand %p2244_p13, %p3112_p12 }
  0x5c   : > { %s2738_s27 = scalar_lea.hbm %s3111_s2, %s1812_s4  ;;  %p2253_p9 = por %p2252_p3, %p2251_p10 }
  0x5d   : > { %p2247_p5 = pneg %p2246_p0 }
  0x5f   : > { %p2254_p2 = pnand %p2253_p9, %p2247_p5 }
  0x61   : > { %2257 = shalt.err (!%p2254_p2)
}
  0x62   : > { %s3113_s4 = smov 4   ;;  %s3114_s18 = smov 64  }
  0x63   : > { %s3115_s8 = sld [smem:[#allocation41_spill]]  ;;  %s2269_s13 = scalar_lea.vmem %s493_s20, 16 }
  0x64   : > { %p2270_p6 = scmp.ne.s32.totalorder %s493_s20, %s2269_s13  ;;  %p3116_p13 = pmov %p3112_p12 }
  0x65   : > { %s2276_s6 = scalar_lea.vmem %s493_s20, 32  ;;  %p2277_p10 = scmp.lt.s32.totalorder %s493_s20, %s493_s20 }
  0x66   : > { %p2272_p12 = pnand %p2270_p6, %p3116_p13  ;;  %p2278_p5 = scmp.lt.s32.totalorder %s2276_s6, %s2269_s13 }
  0x68   : > { %p2273_p0 = pneg %p2272_p12  ;;  %p2279_p2 = por %p2278_p5, %p2277_p10 }
  0x69   : > { %2022 = dma.hbm_to_vmem [thread:$0]  (!%p2661_p11), %s3115_s8, 256, %s479_s1, [#allocation15], %s3114_s18, %s3114_s18, %s3113_s4  }
  0x6a   : > { %p2280_p3 = pnand %p2279_p2, %p2273_p0 }
  0x6c   : > { %2283 = shalt.err (!%p2280_p3)
}
  0x6d   : > { %2025 = dma.hbm_to_vmem [thread:$0]  (!%p2661_p11), %s3062_s9, 16, %s493_s20, [#allocation18]  }
  0x6e   : > { %s1809_s1 = sshll.u32 %s2706_s25, 3  ;;  %s1810_s14 = sshll.u32 %s2494_s22, 7 }
  0x6f   : > { %s525_s18 = scalar_lea.hbm %s3053_s0, %s1810_s14  ;;  %s519_s21 = scalar_lea.vmem [#allocation5], %s1809_s1 }
  0x70   : > { %s527_s29 = sshll.u32 %s519_s21, 4  ;;  %s3117_s13 = sshll.u32 %s2706_s25, 2  ;;  %s528_s29 = int_to_ptr.vmem [resolvable:$true] %s527_s29 }
  0x71   : > { %s556_s16 = scalar_lea.vmem [#allocation10], %s3117_s13  ;;  %s516_s2 = scalar_lea.sflag [#allocation6], %s2706_s25 }
  0x72   : > { %s563_s6 = sshll.u32 %s556_s16, 4  ;;  %s2297_s15 = scalar_lea.vmem %s528_s29, 128  ;;  %s564_s6 = int_to_ptr.vmem [resolvable:$true] %s563_s6 }
  0x73   : > { %p2298_p6 = scmp.ne.s32.totalorder %s528_s29, %s2297_s15  ;;  %p3118_p9 = pneg %p2708_p1 }
  0x74   : > { %s2507_s20 = smov [#allocation5]  }
  0x75   : > { %p2300_p13 = pnand %p2298_p6, %p3118_p9  ;;  %s2302_s12 = sshll.u32 %s2507_s20, 4  ;;  %s2303_s12 = int_to_ptr.vmem [resolvable:$false] %s2302_s12 }
  0x76   : > { %s2304_s8 = scalar_lea.vmem %s2303_s12, 256  ;;  %p2305_p11 = scmp.lt.s32.totalorder %s528_s29, %s2303_s12 }
  0x77   : > { %p2301_p12 = pneg %p2300_p13  ;;  %p2306_p0 = scmp.lt.s32.totalorder %s2304_s8, %s2297_s15 }
  0x79   : > { %p2307_p10 = por %p2306_p0, %p2305_p11 }
  0x7b   : > { %p2308_p5 = pnand %p2307_p10, %p2301_p12 }
  0x7d   : > { %2311 = shalt.err (!%p2308_p5)
}
  0x7e   : > { %2029 = dma.hbm_to_vmem [thread:$0]  (!%p2708_p1), %s525_s18, 128, %s528_s29, %s516_s2  }
  0x7f   : > { %s1815_s1 = sshll.u32 %s2706_s25, 1  ;;  %s2325_s14 = scalar_lea.vmem %s564_s6, 64 }
  0x80   : > { %p2326_p2 = scmp.ne.s32.totalorder %s564_s6, %s2325_s14  ;;  %p3119_p3 = pmov %p3118_p9 }
  0x81   : > { %s2508_s11 = smov [#allocation10]  }
  0x82   : > { %p2328_p6 = pnand %p2326_p2, %p3119_p3  ;;  %s2330_s4 = sshll.u32 %s2508_s11, 4  ;;  %s2331_s4 = int_to_ptr.vmem [resolvable:$false] %s2330_s4 }
  0x83   : > { %s2332_s8 = scalar_lea.vmem %s2331_s4, 128  ;;  %p2333_p13 = scmp.lt.s32.totalorder %s564_s6, %s2331_s4 }
  0x84   : > { %p2329_p9 = pneg %p2328_p6  ;;  %p2334_p12 = scmp.lt.s32.totalorder %s2332_s8, %s2325_s14 }
  0x86   : > { %p2335_p11 = por %p2334_p12, %p2333_p13 }
  0x88   : > { %p2336_p0 = pnand %p2335_p11, %p2329_p9 }
  0x8a   : > { %2339 = shalt.err (!%p2336_p0)
}
  0x8b   : > { %2035 = dma.hbm_to_vmem [thread:$0]  (!%p2708_p1), %s2738_s27, 64, %s564_s6, %s2725_s30  }
  0x8c   : > { %s1816_s2 = sshll.u32 %s2494_s22, 5  ;;  %s574_s29 = scalar_lea.vmem [#allocation11], %s1815_s1 }
  0x8d   : > { %s580_s21 = scalar_lea.hbm %s3056_s3, %s1816_s2  ;;  %s582_s13 = sshll.u32 %s574_s29, 4  ;;  %s583_s13 = int_to_ptr.vmem [resolvable:$true] %s582_s13 }
  0x8e   : > { %s3120_s16 = sand.u32 1, %s2498_s23   ;;  %s2353_s20 = scalar_lea.vmem %s583_s13, 32 }
  0x8f   : > { %s571_s15 = scalar_lea.sflag [#allocation12], %s3120_s16  ;;  %p2354_p10 = scmp.ne.s32.totalorder %s583_s13, %s2353_s20 }
  0x90   : > { %p3121_p5 = pmov %p3119_p3  ;;  %s2509_s12 = smov [#allocation11]  }
  0x91   : > { %s2358_s14 = sshll.u32 %s2509_s12, 4  ;;  %s2359_s14 = int_to_ptr.vmem [resolvable:$false] %s2358_s14 }
  0x92   : > { %p2356_p2 = pnand %p2354_p10, %p3121_p5  ;;  %s2360_s27 = scalar_lea.vmem %s2359_s14, 64 }
  0x93   : > { %p2361_p6 = scmp.lt.s32.totalorder %s583_s13, %s2359_s14  ;;  %p2362_p9 = scmp.lt.s32.totalorder %s2360_s27, %s2353_s20 }
  0x94   : > { %p2357_p3 = pneg %p2356_p2 }
  0x95   : > { %p2363_p13 = por %p2362_p9, %p2361_p6 }
  0x97   : > { %p2364_p12 = pnand %p2363_p13, %p2357_p3 }
  0x99   : > { %2367 = shalt.err (!%p2364_p12)
}
  0x9a   : > { %2038 = dma.hbm_to_vmem [thread:$0]  (!%p2708_p1), %s580_s21, 32, %s583_s13, %s571_s15  }
  0x9b   : > { %591 = sbr.rel (%p2652_p8) target bundleno = 2294 (0x8f6), region = 76  ;;  %s2794_s30 = sand.u32 (!%p2652_p8), 1, %s2482_s19  }
  0x9c   : > { %s1818_s6 = sshll.u32 (!%p2652_p8), %s2794_s30, 3  ;;  %s594_s1 = scalar_lea.sflag (!%p2652_p8), [#allocation6], %s2794_s30 }
  0x9d   : > { %s2800_s11 = scalar_lea.vmem (!%p2652_p8), [#allocation5], %s1818_s6 }
  0xa0   : > { %2445 = dma.done.wait (%p2642_p4), %s594_s1, 128  }
  0xa1   : > { %2447 = vsyncadd (%p2642_p4), %s594_s1, 4294967168  ;;  %s602_s28 = sand.u32 1, %s2633_s24   ;;  %s1819_s17 = sshll.u32 %s2794_s30, 2 }
  0xa2   : > { %s603_s4 = scalar_lea.sflag [#allocation9], %s602_s28  ;;  %s2808_s8 = scalar_lea.vmem [#allocation8], %s1819_s17 }
  0xa3   : > { %2449 = dma.done.wait (%p2642_p4), %s603_s4, 128  }
  0xa4   : > { %2451 = vsyncadd (%p2642_p4), %s603_s4, 4294967168  ;;  %s1821_s2 = sshll.u32 %s2794_s30, 1  ;;  %s2815_s25 = scalar_lea.vmem [#allocation10], %s1819_s17 }
  0xa5   : > { %s621_s18 = scalar_lea.sflag [#allocation12], %s602_s28  ;;  %s2817_s21 = scalar_lea.vmem [#allocation11], %s1821_s2 }
  0xa6   : > { %2453 = dma.done.wait (%p2642_p4), %s621_s18, 32  }
  0xa7   : > { %2455 = vsyncadd (%p2642_p4), %s621_s18, 4294967264  ;;  %p3122_p1 = scmp.eq.s32.totalorder %s2633_s24, 0 }
  0xa9   : > { %2457 = dma.done.wait (%p3122_p1), [#allocation12], 256   ;;  %p3123_p8 = pmov %p3122_p1 }
  0xaa   : > { %p3124_p11 = pmov %p3122_p1 }
  0xab   : > { %2459 = vsyncadd (%p3123_p8), [#allocation12], 4294967040 }
  0xac   : > { %2461 = dma.done.wait (%p3124_p11), [#allocation15], 512   ;;  %p3125_p0 = pmov %p3122_p1 }
  0xae   : > { %2463 = vsyncadd (%p3125_p0), [#allocation15], 4294966784  ;;  %p3126_p10 = pmov %p3125_p0 }
  0xaf   : > { %p3127_p5 = pmov %p3125_p0 }
  0xb0   : > { %2465 = dma.done.wait (%p3126_p10), [#allocation18], 16  }
  0xb1   : > { %2467 = vsyncadd (%p3127_p5), [#allocation18], 4294967280  ;;  %v2510_v0 = vmov 0.0   ;;  %vm2511_vm0 = vmmov 0   ;;  %vm734_vm1 = vcmask 261120   ;;  %v2120_v1 = vld [vmem:[#allocation14 + $0x8] sm:$0xff]  }
  0xb2   : > { %1905 = vmatprep.subr.bf16.mxu0 %v2510_v0  ;;  %1909 = vmatprep.mubr.msk.bf16.mxu0 %vm2511_vm0, %v2510_v0  ;;  %v742_v2 = vsel %vm734_vm1, %v2120_v1, 0  ;;  %v2121_v3 = vld [vmem:[#allocation14] sm:$0xff]   ;;  %v2124_v4 = vld [vmem:[#allocation16 + $0x8] sm:$0xff]   ;;  %v2123_v10 = vld [vmem:[#allocation13] sm:$0xff]   ;;  %vm856_vm2 = vcmask 257024   ;;  %vm940_vm3 = vcmask 64512  }
  0xb3   : > { %1913 = vmatprep.subr.bf16.mxu1 %v2510_v0  ;;  %1917 = vmatprep.mubr.msk.bf16.mxu1 %vm2511_vm0, %v2510_v0  ;;  %v813_v5 = vsel %vm734_vm1, %v2124_v4, 0  ;;  %v739_v6 = vsel %vm734_vm1, %v2121_v3, 0  ;;  %v2122_v7 = vld [vmem:[#allocation13 + $0x8] sm:$0xff]   ;;  %v888_v11 = vsel %vm734_vm1, %v2123_v10, 0  ;;  %v2125_v14 = vld [vmem:[#allocation16] sm:$0xff]   ;;  %s2512_s29 = smov 120  }
  0xb4   : > { %1906 = vmatpush3.bf16.xpose.msra.mxu0 %v742_v2  ;;  %1914 = vmatpush3.bf16.xpose.msra.mxu1 %v813_v5  ;;  %v712_v8 = vld [vmem:[%s2808_s8] sm:$0xf]  ;;  %v891_v9 = vsel %vm734_vm1, %v2122_v7, 0  ;;  %v2855_v12 = vld [vmem:[%s2800_s11] sm:$0xff]  ;;  %v810_v15 = vsel %vm734_vm1, %v2125_v14, 0  ;;  %s2513_s15 = smov 112  }
  0xb5   : > { %1907 = vmatprep.subr.bf16.mxu0 %v2510_v0  ;;  %1915 = vmatprep.subr.bf16.mxu1 %v2510_v0  ;;  %v861_v13 = vpack.c.bf16 %v2855_v12, %v2855_v12  ;;  %v784_v16 = vld [vmem:[%s2815_s25] sm:$0xf]  ;;  %v1828_v17 = vld [vmem:[%s3060_s7] ss:$0 sm:$0xff]  ;;  %s2514_s20 = smov 104   ;;  %vm1005_vm4 = vcmask 1043456  }
  0xb6   : > { %v1836_v27 = vld [vmem:[%s3058_s5] ss:$0 sm:$0xff]  ;;  %v935_v45 = vld [vmem:[%s2817_s21] sm:$0x3]  ;;  %s1827_s12 = sshll.u32 %s2794_s30, 4  ;;  %vm1000_vm6 = vcmask 60416  }
  0xb7   : > { %v1832_v36 = vld [vmem:[#allocation17] ss:$0 sm:$0xff]  ;;  %v936_v46 = vunpack.c.0.s8 %v935_v45  ;;  %s2909_s14 = scalar_lea.vmem [#allocation20], %s1827_s12  ;;  %s2515_s11 = smov 8   ;;  %vm1180_vm7 = vcmask 126016   ;;  %vm1310_vm8 = vcmask 191616  }
  0xb8   : > { %s2516_s4 = smov 16   ;;  %s2517_s8 = smov 24   ;;  %vm1440_vm9 = vcmask 257216  }
  0xb9   : > { %vm2890_vm5 = vcmp.ne.s32.totalorder %v936_v46, 0  ;;  %s3130_s18 = sld [smem:[#allocation42_spill]]  ;;  %s1551_s12 = scalar_lea.sflag [#allocation21], %s2794_s30 }
  0xba   : > { %s3131_s21 = sld [smem:[#allocation32_spill]]  ;;  %s2518_s1 = smov [#allocation20]  }
  0xbc   : > { %1908 = vmatpush3.bf16.xpose.msra.mxu0 %v739_v6  ;;  %1916 = vmatpush3.bf16.xpose.msra.mxu1 %v810_v15 }
  0xbd   : > { %1921 = vmatprep.subr.bf16.mxu0 %v2510_v0  ;;  %1929 = vmatprep.subr.bf16.mxu1 %v2510_v0 }
  0xc0   : > { %s1876_s26 = sshll.u32 %s3131_s21, 8 }
  0xc3   : > { %1910 = vmatmul.mubr.msk.bf16.vlgmr.msra.gmra.mxu0 %vm734_vm1, %v712_v8  ;;  %1918 = vmatmul.mubr.msk.bf16.vlgmr.msra.gmra.mxu1 %vm734_vm1, %v784_v16 }
  0xc4   : > { %1922 = vmatpush3.bf16.xpose.msra.mxu0 %v891_v9  ;;  %1925 = vmatprep.mubr.msk.bf16.mxu0 %vm2511_vm0, %v2510_v0 }
  0xc5   : > { %1923 = vmatprep.subr.bf16.mxu0 %v2510_v0  ;;  %1931 = vmatprep.mubr.msk.bf16.mxu1 %vm2511_vm0, %v2510_v0 }
  0xcc   : > { %1924 = vmatpush3.bf16.xpose.msra.mxu0 %v888_v11 }
  0xcd   : > { %1953 = vmatprep.subr.bf16.mxu0 %v2510_v0 }
  0xd3   : > { %1926 = vmatmul.mubr.msk.bf16.vlgmr.msra.gmra.mxu0 %vm734_vm1, %v861_v13 }
  0xd4   : > { %1955 = vmatprep.mubr.msk.bf16.mxu0 %vm2511_vm0, %v2510_v0 }
 0x183   : > { %v778_v18 = vpop.f32.mrf.mxu0  ;;  %v849_v37 = vpop.f32.mrf.mxu1 }
 0x184   : > { %v779_v19 = vadd.f32 %v1828_v17, %v778_v18  ;;  %v850_v38 = vadd.f32 %v1832_v36, %v849_v37 }
 0x185   : > { %v1911_v20 = vpop.f32.mrf.mxu0  ;;  %v1919_v39 = vpop.f32.mrf.mxu1 }
 0x186   : > { %v855_v21 = vpack.c.bf16 %v779_v19, %v779_v19  ;;  %v858_v40 = vpack.c.bf16 %v850_v38, %v850_v38 }
 0x187   : > { %v781_v22 = vpop.f32.mrf.mxu0  ;;  %v852_v41 = vpop.f32.mrf.mxu1 }
 0x188   : > { %857 = vst.msk [vmem:[#allocation2] sm:$0xf] %vm856_vm2, %v855_v21  ;;  %859 = vst.msk [vmem:[#allocation3] sm:$0xf] %vm856_vm2, %v858_v40 }
 0x189   : > { %v1912_v23 = vpop.f32.mrf.mxu0  ;;  %v1920_v42 = vpop.f32.mrf.mxu1 }
 0x18f   : > { %v938_v24 = vld [vmem:[#allocation2] sm:$0xf]  ;;  %v939_v43 = vld [vmem:[#allocation3] sm:$0xf] }
 0x190   : > { %v2126_v25 = vld [vmem:[#allocation2] ss:$0 sps:$4 sm:$0xff]   ;;  %v945_v26 = vsel %vm940_vm3, %v938_v24, 0  ;;  %v1007_v44 = vsel %vm1005_vm4, %v939_v43, 0 }
 0x191   : > { %1930 = vmatpush3.bf16.xpose.msra.mxu1 %v945_v26  ;;  %1059 = vrot.lane.b32.xlu1 %v2126_v25, %s2512_s29  ;;  %v2127_v35 = vld [vmem:[#allocation2] ss:$0 sps:$4 sm:$0xff]  }
 0x192   : > { %1935 = vmatprep.subr.bf16.mxu1 %v2510_v0  ;;  %v2128_v59 = vld [vmem:[#allocation2] ss:$0 sps:$4 sm:$0xff]  }
 0x193   : > { %v927_v28 = vpop.f32.mrf.mxu0 }
 0x194   : > { %v928_v29 = vadd.f32 %v1836_v27, %v927_v28 }
 0x195   : > { %v1927_v30 = vpop.f32.mrf.mxu0 }
 0x196   : > { %v933_v31 = vmul.f32 0.35355338, %v928_v29 }
 0x197   : > { %v930_v32 = vpop.f32.mrf.mxu0 }
 0x198   : > { %v934_v33 = vpack.c.bf16 %v933_v31, %v933_v31 }
 0x199   : > { %v1928_v34 = vpop.f32.mrf.mxu0 }
 0x19a   : > { %1054 = vrot.lane.b32.xlu1 %v934_v33, %s2512_s29  ;;  %1932 = vmatmul.mubr.msk.bf16.vlgmr.msra.gmra.mxu1 %vm940_vm3, %v934_v33 }
 0x19b   : > { %1937 = vmatprep.mubr.msk.bf16.mxu1 %vm2511_vm0, %v2510_v0  ;;  %1936 = vmatpush3.bf16.msra.mxu1 %v1007_v44 }
 0x19c   : > { %1941 = vmatprep.subr.bf16.mxu1 %v2510_v0 }
 0x19e   : > { %1184 = vrot.lane.b32.xlu1 %v934_v33, %s2513_s15 }
 0x1a2   : > { %1319 = vrot.lane.b32.xlu1 %v2127_v35, %s2514_s20 }
 0x1a6   : > { %1314 = vrot.lane.b32.xlu1 %v934_v33, %s2514_s20 }
 0x203   : > { %v1060_v60 = vpop.permute.xlu1 %1059 }
 0x204   : > { %v1065_v8 = vsel %vm940_vm3, %v1060_v60, 0 }
 0x20c   : > { %v1055_v61 = vpop.permute.xlu1 %1054 }
 0x210   : > { %v1185_v63 = vpop.permute.xlu1 %1184 }
 0x214   : > { %v1320_v3 = vpop.permute.xlu1 %1319 }
 0x215   : > { %v1325_v4 = vsel %vm940_vm3, %v1320_v3, 0 }
 0x218   : > { %v1315_v9 = vpop.permute.xlu1 %1314 }
 0x25a   : > { %v981_v48 = vpop.f32.mrf.mxu1 }
 0x25b   : > { %v987_v49 = vsel %vm2890_vm5, -1e+09, %v981_v48  ;;  %v2129_v48 = vld [vmem:[#allocation3] ss:$0 sps:$4 sm:$0xff]  }
 0x25c   : > { %v1933_v50 = vpop.f32.mrf.mxu1  ;;  %v988_v51 = vsel %vm940_vm3, %v987_v49, -inf }
 0x25d   : > { %989 = vmax.xlane.f32.xlu0 %v988_v51  ;;  %v2130_v50 = vld [vmem:[#allocation3] ss:$0 sps:$4 sm:$0xff]  }
 0x25e   : > { %v984_v52 = vpop.f32.mrf.mxu1  ;;  %v2131_v51 = vld [vmem:[#allocation3] ss:$0 sps:$4 sm:$0xff]  }
 0x260   : > { %v1934_v53 = vpop.f32.mrf.mxu1 }
 0x2e6   : > { %v990_v54 = vpop.xlane.xlu0 %989 }
 0x2e7   : > { %v991_v55 = vsub.f32 %v987_v49, %v990_v54 }
 0x2e9   : > { %v992_v56 = vmul.f32 1.442695, %v991_v55 }
 0x2eb   : > { %2134 = vpow2.f32 %v992_v56 }
 0x2f8   : > { %v2135_v57 = vpop.eup %2134 }
 0x2f9   : > { %v994_v58 = vsel %vm940_vm3, %v2135_v57, 0.0 }
 0x2fa   : > { %995 = vadd.xlane.f32.xlu0 %v994_v58 }
 0x310   : > { %1189 = vrot.lane.b32.xlu0 %v2128_v59, %s2513_s15 }
 0x383   : > { %v996_v62 = vpop.xlane.xlu0 %995 }
 0x384   : > { %2136 = vrcp.f32 %v996_v62 }
 0x387   : > { %v1190_v1 = vpop.permute.xlu0 %1189 }
 0x388   : > { %v1195_v2 = vsel %vm940_vm3, %v1190_v1, 0 }
 0x389   : > { %1954 = vmatpush3.bf16.xpose.msra.mxu0 %v1195_v2 }
 0x38a   : > { %1965 = vmatprep.subr.bf16.mxu0 %v2510_v0 }
 0x390   : > { %1956 = vmatmul.mubr.msk.bf16.vlgmr.msra.gmra.mxu0 %vm940_vm3, %v1185_v63 }
 0x391   : > { %v2137_v5 = vpop.eup %2136  ;;  %1966 = vmatpush3.bf16.xpose.msra.mxu0 %v1325_v4  ;;  %1967 = vmatprep.mubr.msk.bf16.mxu0 %vm2511_vm0, %v2510_v0 }
 0x392   : > { %v998_v6 = vmul.f32 %v2137_v5, %v2135_v57  ;;  %1977 = vmatprep.subr.bf16.mxu0 %v2510_v0 }
 0x394   : > { %v999_v7 = vpack.c.bf16 %v998_v6, %v998_v6 }
 0x396   : > { %1938 = vmatmul.mubr.msk.bf16.vlgmr.msra.gmra.mxu1 %vm940_vm3, %v999_v7  ;;  %1001 = vst.msk [vmem:[%s2909_s14] sm:$0xf] %vm1000_vm6, %v999_v7  ;;  %v2132_v7 = vld [vmem:[%s3063_s10 + $0x8] sm:$0xff]  }
 0x397   : > { %1942 = vmatpush3.bf16.xpose.msra.mxu1 %v1065_v8  ;;  %1943 = vmatprep.mubr.msk.bf16.mxu1 %vm2511_vm0, %v2510_v0  ;;  %v1471_v8 = vsel %vm734_vm1, %v2132_v7, 0 }
 0x398   : > { %1968 = vmatmul.mubr.msk.bf16.vlgmr.msra.gmra.mxu0 %vm940_vm3, %v1315_v9  ;;  %1947 = vmatprep.subr.bf16.mxu1 %v2510_v0 }
 0x399   : > { %1981 = vmatprep.mubr.msk.bf16.mxu0 %vm2511_vm0, %v2510_v0  ;;  %1978 = vmatpush3.bf16.xpose.msra.mxu0 %v1471_v8 }
 0x39a   : > { %1979 = vmatprep.subr.bf16.mxu0 %v2510_v0 }
 0x39e   : > { %1944 = vmatmul.mubr.msk.bf16.vlgmr.msra.gmra.mxu1 %vm940_vm3, %v1055_v61 }
 0x39f   : > { %1949 = vmatprep.mubr.msk.bf16.mxu1 %vm2511_vm0, %v2510_v0 }
 0x450   : > { %v1231_v10 = vpop.f32.mrf.mxu0 }
 0x451   : > { %v1237_v11 = vsel %vm2890_vm5, -1e+09, %v1231_v10 }
 0x452   : > { %v1957_v13 = vpop.f32.mrf.mxu0  ;;  %v1238_v14 = vsel %vm940_vm3, %v1237_v11, -inf }
 0x453   : > { %1239 = vmax.xlane.f32.xlu0 %v1238_v14  ;;  %v2133_v14 = vld [vmem:[%s3063_s10] sm:$0xff]  }
 0x454   : > { %v1234_v15 = vpop.f32.mrf.mxu0 }
 0x456   : > { %v1043_v16 = vpop.f32.mrf.mxu1  ;;  %v1958_v17 = vpop.f32.mrf.mxu0 }
 0x457   : > { %v1049_v18 = vpack.c.bf16 %v1043_v16, %v1043_v16  ;;  %v1468_v16 = vsel %vm734_vm1, %v2133_v14, 0 }
 0x458   : > { %v1939_v19 = vpop.f32.mrf.mxu1  ;;  %v1361_v20 = vpop.f32.mrf.mxu0  ;;  %1980 = vmatpush3.bf16.xpose.msra.mxu0 %v1468_v16 }
 0x459   : > { %1050 = vst.msk [vmem:[#allocation4] sm:$0xf] %vm1000_vm6, %v1049_v18  ;;  %v1367_v30 = vsel %vm2890_vm5, -1e+09, %v1361_v20 }
 0x45a   : > { %v1046_v21 = vpop.f32.mrf.mxu1  ;;  %v1969_v22 = vpop.f32.mrf.mxu0  ;;  %v1368_v33 = vsel %vm940_vm3, %v1367_v30, -inf }
 0x45c   : > { %v1940_v23 = vpop.f32.mrf.mxu1  ;;  %v1364_v24 = vpop.f32.mrf.mxu0 }
 0x45e   : > { %v1101_v25 = vpop.f32.mrf.mxu1  ;;  %v1970_v26 = vpop.f32.mrf.mxu0 }
 0x45f   : > { %v1107_v27 = vsel %vm2890_vm5, -1e+09, %v1101_v25 }
 0x460   : > { %v1945_v28 = vpop.f32.mrf.mxu1  ;;  %v1108_v29 = vsel %vm940_vm3, %v1107_v27, -inf }
 0x461   : > { %1109 = vmax.xlane.f32.xlu1 %v1108_v29 }
 0x462   : > { %v1104_v31 = vpop.f32.mrf.mxu1 }
 0x464   : > { %v1946_v32 = vpop.f32.mrf.mxu1 }
 0x465   : > { %1369 = vmax.xlane.f32.xlu1 %v1368_v33 }
 0x4dc   : > { %v1240_v34 = vpop.xlane.xlu0 %1239 }
 0x4dd   : > { %v1241_v35 = vsub.f32 %v1237_v11, %v1240_v34 }
 0x4df   : > { %v1242_v36 = vmul.f32 1.442695, %v1241_v35 }
 0x4e1   : > { %2138 = vpow2.f32 %v1242_v36 }
 0x4ea   : > { %v1110_v37 = vpop.xlane.xlu1 %1109 }
 0x4eb   : > { %v1111_v38 = vsub.f32 %v1107_v27, %v1110_v37 }
 0x4ed   : > { %v1112_v43 = vmul.f32 1.442695, %v1111_v38 }
 0x4ee   : > { %v2139_v39 = vpop.eup %2138  ;;  %v1370_v40 = vpop.xlane.xlu1 %1369 }
 0x4ef   : > { %v1371_v41 = vsub.f32 %v1367_v30, %v1370_v40  ;;  %v1244_v42 = vsel %vm940_vm3, %v2139_v39, 0.0  ;;  %v1860_v30 = vld [vmem:[%s3130_s18] ss:$0 sm:$0xff] }
 0x4f0   : > { %1245 = vadd.xlane.f32.xlu0 %v1244_v42 }
 0x4f1   : > { %v1372_v44 = vmul.f32 1.442695, %v1371_v41 }
 0x4f3   : > { %2140 = vpow2.f32 %v1372_v44 }
 0x4f4   : > { %2142 = vpow2.f32 %v1112_v43 }
 0x500   : > { %v2141_v45 = vpop.eup %2140 }
 0x501   : > { %v1374_v46 = vsel %vm940_vm3, %v2141_v45, 0.0  ;;  %v2143_v47 = vpop.eup %2142 }
 0x502   : > { %1375 = vadd.xlane.f32.xlu1 %v1374_v46  ;;  %v1114_v49 = vsel %vm940_vm3, %v2143_v47, 0.0 }
 0x506   : > { %1125 = vrot.lane.b32.xlu0 %v2129_v48, %s2512_s29  ;;  %1115 = vadd.xlane.f32.xlu1 %v1114_v49  ;;  %s1579_s29 = sshll.u32 %s2909_s14, 4  ;;  %s2979_s29 = int_to_ptr.vmem [resolvable:$true] %s1579_s29 }
 0x507   : > { %s2368_s27 = scalar_lea.vmem %s2979_s29, 256 }
 0x508   : > { %p2369_p4 = scmp.ne.s32.totalorder %s2979_s29, %s2368_s27 }
 0x50a   : > { %p2370_p2 = pnand %p2369_p4, %p2699_p7 }
 0x50c   : > { %p2371_p3 = pneg %p2370_p2 }
 0x517   : > { %1255 = vrot.lane.b32.xlu1 %v2130_v50, %s2513_s15  ;;  %s3133_s15 = sld [smem:[#allocation46_spill]] }
 0x51b   : > { %1385 = vrot.lane.b32.xlu1 %v2131_v51, %s2514_s20 }
 0x51d   : > { %s2977_s20 = scalar_lea.hbm %s3133_s15, %s1876_s26 }
 0x579   : > { %v1246_v52 = vpop.xlane.xlu0 %1245 }
 0x57a   : > { %2144 = vrcp.f32 %v1246_v52 }
 0x57d   : > { %v1126_v53 = vpop.permute.xlu0 %1125 }
 0x57e   : > { %v1131_v54 = vsel %vm1005_vm4, %v1126_v53, 0 }
 0x57f   : > { %1948 = vmatpush3.bf16.msra.mxu1 %v1131_v54 }
 0x580   : > { %1959 = vmatprep.subr.bf16.mxu1 %v2510_v0 }
 0x587   : > { %v2145_v55 = vpop.eup %2144 }
 0x588   : > { %v1248_v56 = vmul.f32 %v2145_v55, %v2139_v39 }
 0x58a   : > { %v1249_v57 = vpack.c.bf16 %v1248_v56, %v1248_v56 }
 0x58b   : > { %v1376_v58 = vpop.xlane.xlu1 %1375 }
 0x58c   : > { %2146 = vrcp.f32 %v1376_v58  ;;  %1850 = vst.msk [vmem:[%s2909_s14 + $0x8] sm:$0xf] %vm1000_vm6, %v1249_v57 }
 0x58f   : > { %v1116_v59 = vpop.xlane.xlu1 %1115 }
 0x590   : > { %2148 = vrcp.f32 %v1116_v59 }
 0x593   : > { %v1256_v2 = vpop.permute.xlu1 %1255 }
 0x594   : > { %v1261_v4 = vsel %vm1005_vm4, %v1256_v2, 0 }
 0x597   : > { %v1386_v5 = vpop.permute.xlu1 %1385 }
 0x598   : > { %v1391_v6 = vsel %vm1005_vm4, %v1386_v5, 0 }
 0x599   : > { %v2147_v60 = vpop.eup %2146 }
 0x59a   : > { %v1378_v61 = vmul.f32 %v2147_v60, %v2141_v45 }
 0x59c   : > { %v1379_v62 = vpack.c.bf16 %v1378_v61, %v1378_v61 }
 0x59d   : > { %v2149_v63 = vpop.eup %2148 }
 0x59e   : > { %v1118_v1 = vmul.f32 %v2149_v63, %v2143_v47  ;;  %1856 = vst.msk [vmem:[%s2909_s14 + $0xc] sm:$0xf] %vm1000_vm6, %v1379_v62 }
 0x5a0   : > { %v1119_v3 = vpack.c.bf16 %v1118_v1, %v1118_v1 }
 0x5a2   : > { %1844 = vst.msk [vmem:[%s2909_s14 + $0x4] sm:$0xf] %vm1000_vm6, %v1119_v3  ;;  %1950 = vmatmul.mubr.msk.bf16.vlgmr.msra.gmra.mxu1 %vm940_vm3, %v1119_v3 }
 0x5a3   : > { %1960 = vmatpush3.bf16.msra.mxu1 %v1261_v4  ;;  %1961 = vmatprep.mubr.msk.bf16.mxu1 %vm2511_vm0, %v2510_v0 }
 0x5a4   : > { %1971 = vmatprep.subr.bf16.mxu1 %v2510_v0 }
 0x5aa   : > { %1962 = vmatmul.mubr.msk.bf16.vlgmr.msra.gmra.mxu1 %vm940_vm3, %v1249_v57 }
 0x5ab   : > { %1972 = vmatpush3.bf16.msra.mxu1 %v1391_v6  ;;  %1973 = vmatprep.mubr.msk.bf16.mxu1 %vm2511_vm0, %v2510_v0 }
 0x5b2   : > { %1974 = vmatmul.mubr.msk.bf16.vlgmr.msra.gmra.mxu1 %vm940_vm3, %v1379_v62 }
 0x662   : > { %v1167_v9 = vpop.f32.mrf.mxu1 }
 0x663   : > { %v1873_v10 = vpack.c.bf16 %v1167_v9, %v1167_v9 }
 0x664   : > { %v1951_v11 = vpop.f32.mrf.mxu1 }
 0x665   : > { %1177 = vrot.lane.b32.xlu0 %v1873_v10, %s2515_s11  ;;  %s2372_s11 = sshll.u32 %s2518_s1, 4  ;;  %s2373_s11 = int_to_ptr.vmem [resolvable:$false] %s2372_s11 }
 0x666   : > { %v1170_v13 = vpop.f32.mrf.mxu1  ;;  %s2374_s14 = scalar_lea.vmem %s2373_s11, 512  ;;  %p2375_p6 = scmp.lt.s32.totalorder %s2979_s29, %s2373_s11 }
 0x667   : > { %p2376_p9 = scmp.lt.s32.totalorder %s2374_s14, %s2368_s27 }
 0x668   : > { %v1952_v15 = vpop.f32.mrf.mxu1 }
 0x669   : > { %p2377_p13 = por %p2376_p9, %p2375_p6 }
 0x66a   : > { %v1297_v17 = vpop.f32.mrf.mxu1 }
 0x66b   : > { %v1874_v18 = vpack.c.bf16 %v1297_v17, %v1297_v17  ;;  %p2378_p12 = pnand %p2377_p13, %p2371_p3 }
 0x66c   : > { %v1963_v19 = vpop.f32.mrf.mxu1 }
 0x66d   : > { %1307 = vrot.lane.b32.xlu1 %v1874_v18, %s2516_s4 }
 0x66e   : > { %v1300_v20 = vpop.f32.mrf.mxu1 }
 0x670   : > { %v1964_v21 = vpop.f32.mrf.mxu1 }
 0x672   : > { %v1427_v0 = vpop.f32.mrf.mxu1 }
 0x673   : > { %v1875_v22 = vpack.c.bf16 %v1427_v0, %v1427_v0 }
 0x674   : > { %v1975_v23 = vpop.f32.mrf.mxu1 }
 0x675   : > { %1437 = vrot.lane.b32.xlu0 %v1875_v22, %s2517_s8 }
 0x676   : > { %v1430_v24 = vpop.f32.mrf.mxu1 }
 0x678   : > { %v1976_v25 = vpop.f32.mrf.mxu1 }
 0x6d7   : > { %v1178_v26 = vpop.permute.xlu0 %1177 }
 0x6d8   : > { %1181 = vst.msk [vmem:[#allocation4] sm:$0xf] %vm1180_vm7, %v1178_v26 }
 0x6df   : > { %v1308_v27 = vpop.permute.xlu1 %1307 }
 0x6e0   : > { %1311 = vst.msk [vmem:[#allocation4] sm:$0xf] %vm1310_vm8, %v1308_v27 }
 0x6e7   : > { %v1438_v28 = vpop.permute.xlu0 %1437 }
 0x6e8   : > { %1441 = vst.msk [vmem:[#allocation4] sm:$0xf] %vm1440_vm9, %v1438_v28 }
 0x6ef   : > { %v1442_v29 = vld [vmem:[#allocation4] sm:$0xf] }
 0x6f0   : > { %1982 = vmatmul.mubr.msk.bf16.vlgmr.msra.gmra.mxu0 %vm734_vm1, %v1442_v29 }
 0x7b0   : > { %v1507_v31 = vpop.f32.mrf.mxu0 }
 0x7b1   : > { %v1508_v32 = vadd.f32 %v1860_v30, %v1507_v31 }
 0x7b2   : > { %v1983_v33 = vpop.f32.mrf.mxu0 }
 0x7b3   : > { %v1513_v34 = vadd.f32 %v1508_v32, %v2855_v12 }
 0x7b4   : > { %v1510_v35 = vpop.f32.mrf.mxu0 }
 0x7b5   : > { %v1514_v36 = vsel %vm734_vm1, %v1513_v34, 0.0 }
 0x7b6   : > { %1515 = vadd.xlane.f32.xlu1 %v1514_v36  ;;  %v1984_v37 = vpop.f32.mrf.mxu0 }
 0x83f   : > { %v1516_v38 = vpop.xlane.xlu1 %1515 }
 0x840   : > { %v1518_v39 = vmul.f32 0.03125, %v1516_v38 }
 0x842   : > { %v1519_v40 = vsub.f32 %v1513_v34, %v1518_v39 }
 0x844   : > { %v1520_v41 = vmul.f32 %v1519_v40, %v1519_v40 }
 0x846   : > { %v1521_v42 = vsel %vm734_vm1, %v1520_v41, 0.0 }
 0x847   : > { %1522 = vadd.xlane.f32.xlu0 %v1521_v42 }
 0x848   : > { %2381 = shalt.err (!%p2378_p12)
}
 0x849   : > { %s2382_s28 = scalar_lea.hbm %s2977_s20, 256  ;;  %s2386_s8 = scalar_lea.hbm %s3133_s15, 512 }
 0x84a   : > { %p2383_p1 = scmp.ne.s32.totalorder %s2977_s20, %s2382_s28  ;;  %p2387_p0 = scmp.lt.s32.totalorder %s2977_s20, %s3133_s15 }
 0x84b   : > { %p2388_p10 = scmp.lt.s32.totalorder %s2386_s8, %s2382_s28 }
 0x84c   : > { %p2384_p8 = pnand %p2383_p1, %p2699_p7 }
 0x84d   : > { %p2389_p5 = por %p2388_p10, %p2387_p0 }
 0x84e   : > { %p2385_p11 = pneg %p2384_p8 }
 0x850   : > { %p2390_p4 = pnand %p2389_p5, %p2385_p11 }
 0x852   : > { %2393 = shalt.err (!%p2390_p4)
}
 0x853   : > { %s2519_s18 = smov 64   ;;  %s2520_s26 = smov 4  }
 0x854   : > { %2010 = dma.vmem_to_hbm [thread:$0]  (%p2699_p7), %s2979_s29, 256, %s2977_s20, %s1551_s12, %s2519_s18, %s2519_s18, %s2520_s26  }
 0x855   : > { %s3134_s27 = sld [smem:[#allocation43_spill]]  ;;  %s1868_s28 = sshll.u32 %s3131_s21, 7 }
 0x856   : > { %s3135_s14 = sld [smem:[#allocation44_spill]]  ;;  %s699_s17 = scalar_lea.vmem [#allocation19], %s1818_s6 }
 0x857   : > { %s1565_s29 = sshll.u32 %s699_s17, 4  ;;  %s3136_s4 = sld [smem:[#allocation45_spill]]  ;;  %s1566_s29 = int_to_ptr.vmem [resolvable:$true] %s1565_s29 }
 0x858   : > { %s1546_s2 = scalar_lea.sflag [#allocation7], %s2794_s30  ;;  %s2394_s25 = scalar_lea.vmem %s1566_s29, 128 }
 0x859   : > { %p2395_p2 = scmp.ne.s32.totalorder %s1566_s29, %s2394_s25  ;;  %s2521_s18 = smov [#allocation19]  }
 0x85a   : > { %s2398_s21 = sshll.u32 %s2521_s18, 4  ;;  %s2399_s21 = int_to_ptr.vmem [resolvable:$false] %s2398_s21 }
 0x85b   : > { %v1864_v46 = vld [vmem:[%s3134_s27] ss:$0 sm:$0xff]  ;;  %p2396_p3 = pnand %p2395_p2, %p2699_p7  ;;  %s2400_s6 = scalar_lea.vmem %s2399_s21, 256 }
 0x85c   : > { %v1865_v48 = vld [vmem:[%s3135_s14] ss:$0 sm:$0xff]  ;;  %p2401_p9 = scmp.lt.s32.totalorder %s1566_s29, %s2399_s21  ;;  %p2402_p13 = scmp.lt.s32.totalorder %s2400_s6, %s2394_s25 }
 0x85d   : > { %s1563_s8 = scalar_lea.hbm %s3136_s4, %s1868_s28  ;;  %p2397_p6 = pneg %p2396_p3 }
 0x85e   : > { %p2403_p12 = por %p2402_p13, %p2401_p9 }
 0x860   : > { %p2404_p1 = pnand %p2403_p12, %p2397_p6 }
 0x8d0   : > { %v1523_v12 = vpop.xlane.xlu0 %1522 }
 0x8d1   : > { %v1524_v43 = vmul.f32 0.03125, %v1523_v12 }
 0x8d3   : > { %v1525_v44 = vadd.f32 1e-05, %v1524_v43 }
 0x8d5   : > { %2150 = vrsqrt.f32 %v1525_v44 }
 0x8e2   : > { %v2151_v45 = vpop.eup %2150 }
 0x8e3   : > { %v1527_v47 = vmul.f32 %v2151_v45, %v1519_v40 }
 0x8e5   : > { %v1535_v49 = vmul.f32 %v1864_v46, %v1527_v47 }
 0x8e7   : > { %v1543_v50 = vadd.f32 %v1865_v48, %v1535_v49 }
 0x8e9   : > { %1544 = vst.msk [vmem:[%s699_s17] sm:$0xff] %vm734_vm1, %v1543_v50 }
 0x8ea   : > { %2407 = shalt.err (!%p2404_p1)
}
 0x8eb   : > { %s2408_s26 = scalar_lea.hbm %s1563_s8, 128  ;;  %s2412_s16 = scalar_lea.hbm %s3136_s4, 256 }
 0x8ec   : > { %p2409_p8 = scmp.ne.s32.totalorder %s1563_s8, %s2408_s26  ;;  %p2413_p10 = scmp.lt.s32.totalorder %s1563_s8, %s3136_s4 }
 0x8ed   : > { %p2414_p5 = scmp.lt.s32.totalorder %s2412_s16, %s2408_s26 }
 0x8ee   : > { %p2410_p11 = pnand %p2409_p8, %p2699_p7 }
 0x8ef   : > { %p2415_p4 = por %p2414_p5, %p2413_p10 }
 0x8f0   : > { %p2411_p0 = pneg %p2410_p11 }
 0x8f2   : > { %p2416_p2 = pnand %p2415_p4, %p2411_p0 }
 0x8f4   : > { %2419 = shalt.err (!%p2416_p2)
}
 0x8f5   : > { %2009 = dma.vmem_to_hbm [thread:$0]  (%p2699_p7), %s1566_s29, 128, %s1563_s8, %s1546_s2  }
 0x8f6 PF: > { %s3137_s11 = sld [smem:[#allocation30_spill]]  ;;  %p3140_p6 = scmp.ge.s32.totalorder %s2498_s23, 2 }
 0x8f7   : > { %s3138_s14 = sld [smem:[#allocation33_spill]] }
 0x8fc   : > { %s1594_s28 = sand.u32 1, %s3137_s11  }
 0x8fd   : > { %p3139_p3 = scmp.ne.s32.totalorder %s3138_s14, 0  ;;  %s1595_s17 = scalar_lea.sflag [#allocation7], %s1594_s28 }
 0x8ff   : > { %p2040_p9 = pnand %p3140_p6, %p3139_p3 }
 0x901   : > { %p2041_p13 = pneg %p2040_p9 }
 0x903   : > { %2469 = dma.done.wait (%p2041_p13), %s1595_s17, 128  }
 0x904   : > { %2471 = vsyncadd (%p2041_p13), %s1595_s17, 4294967168  ;;  %s1604_s20 = scalar_lea.sflag [#allocation21], %s1594_s28 }
 0x905   : > { %2473 = dma.done.wait (%p2041_p13), %s1604_s20, 256  }
 0x906   : > { %2475 = vsyncadd (%p2041_p13), %s1604_s20, 4294967040  ;;  %s43_s23 = sadd.s32 1, %s2498_s23   ;;  %s3141_s24 = sld [smem:[#allocation31_spill]] }
 0x907   : > { %p40_p12 = scmp.ge.s32.totalorder %s43_s23, 4   ;;  %s3142_s20 = sld [smem:[#allocation36_spill]] }
 0x908   : > { %s3143_s29 = sld [smem:[#allocation34_spill]]  ;;  %s3144_s18 = smov %s2482_s19 }
 0x909   : > { %s3146_s21 = smov %s2494_s22 }
 0x90a   :  { %42 = sbr.rel (!%p40_p12) target bundleno = 25 (0x19), region = 198 }
 0x90c   : > { %s3145_s19 = smov %s3141_s24 }
 0x90e   : > { %s3147_s22 = smov %s3143_s29 }
 0x90f   :  { %1609 = vsyncpa [#allocation6], 1 }
 0x910   :  { %1611 = vsyncpa [#allocation6 + $0x1], 1 }
 0x911   :  { %1612 = vsyncpa [#allocation9], 1 }
 0x912   :  { %1614 = vsyncpa [#allocation9 + $0x1], 1 }
 0x913   :  { %1615 = vsyncpa [#allocation12], 1 }
 0x914   :  { %1617 = vsyncpa [#allocation12 + $0x1], 1 }
 0x915   :  { %1618 = vsyncpa [#allocation15], 1 }
 0x916   :  { %1619 = vsyncpa [#allocation18], 1 }
 0x917   :  { %1620 = vsyncpa [#allocation7], 1 }
 0x918   :  { %1622 = vsyncpa [#allocation7 + $0x1], 1 }
 0x919   :  { %1623 = vsyncpa [#allocation21], 1 }
 0x91a   :  { %1625 = vsyncpa [#allocation21 + $0x1], 1 }

</bundles_post_ra>
